<compile_context>
chip_gen: v7x
topology: tpu7x:2x2x1
jax: 0.10.0
libtpu: 0.0.40
codegen_flags: <defaults>
</compile_context>

<pallas_src>
import functools

import jax
import jax.numpy as jnp
from jax.experimental import pallas as pl
from jax.experimental.pallas import tpu as pltpu

# ----------------------------- model configuration -----------------------------
IN_CH = 1                       # tumor image channels
C1 = 4                          # conv1_filters
C2 = 4                          # conv2_filters
SPATIAL = 16                    # D = H = W
TUMOR_HIDDEN = 32               # Tumor3DNet hidden_layer
TUMOR_LIN_IN = C2 * 1 * 1 * 1   # spatial collapses 16 -> 8 -> 4 -> 2 -> 1
CLINICAL_HIDDEN = [(8, 16), (16, 32)]   # ClinicalNet hidden_layer (inf, outf)
LINEAR_IN = TUMOR_HIDDEN + CLINICAL_HIDDEN[-1][1]   # 32 + 32 = 64
BN_EPS = 1e-5

K1 = 8 * IN_CH   # conv1 patch size (2*2*2*Cin)
P1 = 8           # pool1 window (2*2*2)
K2 = 8           # conv2 spatial patch (2*2*2)
Q2 = 8           # pool2 window (2*2*2)

# SMEM scalar-array layout (folded conv1 weights | conv2 bias+shift | regressor bias)
_W1_STRIDE = K1 + 1                 # 9 scalars per conv1 channel (8 weights + bias)
_OFF_C2B = C1 * _W1_STRIDE          # 36
_OFF_BR = _OFF_C2B + C2             # 40
_SCAL_LEN = _OFF_BR + 1             # 41

# Packed (32, 64) VMEM weight-array column layout.
_COL_WD = 0     # cols 0:8   tumor dense weight (32 x 4, zero-padded to 8)
_COL_WC1 = 8    # cols 8:16  clinical layer-1 weight (16 x 8) in rows 0:16
_COL_WC2 = 16   # cols 16:32 clinical layer-2 weight (32 x 16)
_COL_BD = 32    # tumor dense bias column
_COL_B1, _COL_S1, _COL_T1 = 33, 34, 35   # clinical layer-1 bias / BN scale / BN shift
_COL_B2, _COL_S2, _COL_T2 = 36, 37, 38   # clinical layer-2 bias / BN scale / BN shift
_COL_WRT, _COL_WRC = 39, 40              # regressor weight (tumor / clinical halves)


def _tree_sum(xs):
    """Pairwise (tree) accumulation to halve the dependent-add chain depth."""
    while len(xs) > 1:
        nxt = [xs[i] + xs[i + 1] for i in range(0, len(xs) - 1, 2)]
        if len(xs) % 2:
            nxt.append(xs[-1])
        xs = nxt
    return xs[0]


# ------------------------------ fused Pallas kernel -----------------------------
def _multimodal_kernel(x1_ref, clin_ref, scal_ref, w2lane_ref, wpack_ref, o_ref,
                       *, batch):
    """Fused MultiModalNet forward (single invocation, no grid).

    x1     : (K1, P1, L)      bit-interleaved im2col of the image, L = K2*Q2*B lanes
    clin   : (F0, L)          clinical features, feature-major, batch tiled over lanes
    scal   : (41,)  SMEM      folded conv1 weights/bias, folded conv2 bias, reg bias
    w2lane : (C2, C1, L)      conv2 weights (BN2 folded) lane-expanded per k2 block
    wpack  : (32, 64)         packed dense/clinical/regressor weights + bias/BN columns
    o      : (1, L)           regressor output; lane j holds sample j % batch
    """
    L = x1_ref.shape[2]
    r2 = Q2 * batch                       # lane width of one conv2 kernel-offset block

    x1 = x1_ref[...]                      # (K1, P1, L) -- full (8,128) vregs

    # ---- Tumor3DNet stage 1: conv1 + folded BN1 -> MaxPool3d(2) -> ReLU ----
    pooled_rows = []
    for c in range(C1):
        terms = [scal_ref[c * _W1_STRIDE + k] * x1[k] for k in range(K1)]
        acc = _tree_sum(terms) + scal_ref[c * _W1_STRIDE + K1]   # folded bias + shift
        m = jnp.max(acc, axis=0, keepdims=True)                  # pool1 over sublanes
        pooled_rows.append(jnp.maximum(m, 0.0))                  # ReLU -> (1, L)
    pooled = jnp.concatenate(pooled_rows, axis=0)                # (C1, L) one vreg

    # ---- stage 2: conv2 + folded BN2 -> MaxPool3d(2) -> ReLU ----
    feat_rows = []
    for c2 in range(C2):
        s = jnp.sum(pooled * w2lane_ref[c2], axis=0, keepdims=True)   # (1, L)
        # sum the K2=8 kernel-offset blocks (block width r2) -- XLU roll tree
        for sh in (4 * r2, 2 * r2, r2):
            s = s + pltpu.roll(s, sh, 1)
        # max over the Q2=8 pooling offsets (stride = batch) -- XLU roll tree
        for sh in (4 * batch, 2 * batch, batch):
            s = jnp.maximum(s, pltpu.roll(s, sh, 1))
        feat_rows.append(jnp.maximum(s + scal_ref[_OFF_C2B + c2], 0.0))
    # lane j of every feature row now holds the value of sample (j % batch)
    feat = jnp.concatenate(
        feat_rows + [jnp.zeros((8 - C2, L), jnp.float32)], axis=0)    # (8, L)

    # ---- flatten (1x1x1 spatial == channels) -> dense -> ReLU (MXU, feature-major) ----
    wd = wpack_ref[:, _COL_WD:_COL_WD + 8]            # (32, 8); cols C2..7 are zero
    bd = wpack_ref[:, _COL_BD:_COL_BD + 1]            # (32, 1)
    tumor = jnp.maximum(
        jnp.dot(wd, feat, preferred_element_type=jnp.float32) + bd, 0.0)   # (32, L)

    # ---- ClinicalNet: (Linear -> ReLU -> BatchNorm1d) x 2, feature-major MXU dots ----
    z = clin_ref[...]                                  # (F0, L)
    wc1 = wpack_ref[0:16, _COL_WC1:_COL_WC1 + 8]       # (16, 8)
    b1 = wpack_ref[0:16, _COL_B1:_COL_B1 + 1]
    s1 = wpack_ref[0:16, _COL_S1:_COL_S1 + 1]
    t1 = wpack_ref[0:16, _COL_T1:_COL_T1 + 1]
    h = jnp.maximum(jnp.dot(wc1, z, preferred_element_type=jnp.float32) + b1, 0.0)
    z = h * s1 + t1                                    # (16, L)

    wc2 = wpack_ref[:, _COL_WC2:_COL_WC2 + 16]         # (32, 16)
    b2 = wpack_ref[:, _COL_B2:_COL_B2 + 1]
    s2 = wpack_ref[:, _COL_S2:_COL_S2 + 1]
    t2 = wpack_ref[:, _COL_T2:_COL_T2 + 1]
    h = jnp.maximum(jnp.dot(wc2, z, preferred_element_type=jnp.float32) + b2, 0.0)
    z = h * s2 + t2                                    # (32, L)

    # ---- regressor on concat([tumor, clinical]) == split weight, sublane sums (XLU) ----
    wrt = wpack_ref[:, _COL_WRT:_COL_WRT + 1]          # (32, 1)
    wrc = wpack_ref[:, _COL_WRC:_COL_WRC + 1]          # (32, 1)
    out = (jnp.sum(wrt * tumor, axis=0, keepdims=True)
           + jnp.sum(wrc * z, axis=0, keepdims=True)
           + scal_ref[_OFF_BR])
    o_ref[...] = out                                   # (1, L) unmasked full-lane store


# ------------------------------ host-side plumbing ------------------------------
def _prep_image(images):
    """NCDHW image -> bit-interleaved im2col (K1, P1, K2*Q2*B).

    Each spatial coordinate splits as d = 8*a3 + 4*a2 + 2*a1 + a0 where a0 is the
    conv1 kernel offset, a1 the pool1 offset, a2 the conv2 kernel offset and a3
    the pool2 offset (kernel=2 / stride=2 / pool=2 nest exactly).
      axis 0 (sublane groups): (a0,b0,c0,cin)  -> conv1 contraction
      axis 1 (sublanes)      : (a1,b1,c1)      -> pool1 window
      axis 2 (lanes)         : (a2,b2,c2 | a3,b3,c3 | batch)
    TODO(synk): at large B this host transpose puts batch on the minor axis with an
    image-sized stride; re-tile it (or move the swizzle in-kernel) before scaling B.
    """
    B, Ci, D, H, W = images.shape
    assert Ci == IN_CH and D == H == W == SPATIAL == 16
    x = images.reshape(B, Ci, 2, 2, 2, 2, 2, 2, 2, 2, 2, 2, 2, 2)
    #               axes: 0=B 1=cin 2=a3 3=a2 4=a1 5=a0 6=b3 7=b2 8=b1 9=b0
    #                     10=c3 11=c2 12=c1 13=c0
    x = x.transpose(5, 9, 13, 1, 4, 8, 12, 3, 7, 11, 2, 6, 10, 0)
    return x.reshape(K1, P1, K2 * Q2 * B)


def _bn_affine(gamma, beta, mean, var):
    scale = gamma / jnp.sqrt(var + BN_EPS)
    return scale, beta - mean * scale


def prepare_operands(p, batch):
    """Fold BN / biases and pack weights ONCE at load time (not per forward call)."""
    s1, t1 = _bn_affine(p["bn1_gamma"], p["bn1_beta"], p["bn1_mean"], p["bn1_var"])
    s2, t2 = _bn_affine(p["bn2_gamma"], p["bn2_beta"], p["bn2_mean"], p["bn2_var"])

    # conv1 (C1,Cin,2,2,2) -> (C1, K1), fold BN1 scale; append folded bias + shift.
    w1 = p["conv1_w"].transpose(0, 2, 3, 4, 1).reshape(C1, K1) * s1[:, None]
    w1b = s1 * p["conv1_b"] + t1
    c2b = s2 * p["conv2_b"] + t2
    scal = jnp.concatenate(
        [jnp.concatenate([w1, w1b[:, None]], axis=1).reshape(-1),
         c2b, p["reg_b"].reshape(-1)]).astype(jnp.float32)        # (41,) -> SMEM
    assert scal.shape == (_SCAL_LEN,)

    # conv2 (C2,C1,2,2,2) -> (C2, C1, K2) with BN2 folded, then lane-expanded so each
    # kernel-offset scalar covers its Q2*B-lane block (full-vreg multiplies in-kernel).
    w2k = p["conv2_w"].reshape(C2, C1, K2) * s2[:, None, None]
    w2lane = jnp.repeat(w2k, Q2 * batch, axis=2).astype(jnp.float32)

    # Dense / clinical / regressor weights + per-feature bias/BN columns, one array.
    (wa, ba, ga, bta, mua, vara) = p["clinical"][0]
    (wb, bb, gb, btb, mub, varb) = p["clinical"][1]
    sa, ta = _bn_affine(ga, bta, mua, vara)
    sb, tb = _bn_affine(gb, btb, mub, varb)
    wpack = jnp.zeros((32, 64), jnp.float32)
    wpack = wpack.at[:, _COL_WD:_COL_WD + TUMOR_LIN_IN].set(p["dense_w"])
    wpack = wpack.at[0:16, _COL_WC1:_COL_WC1 + 8].set(wa)
    wpack = wpack.at[:, _COL_WC2:_COL_WC2 + 16].set(wb)
    wpack = wpack.at[:, _COL_BD].set(p["dense_b"])
    wpack = wpack.at[0:16, _COL_B1].set(ba)
    wpack = wpack.at[0:16, _COL_S1].set(sa)
    wpack = wpack.at[0:16, _COL_T1].set(ta)
    wpack = wpack.at[:, _COL_B2].set(bb)
    wpack = wpack.at[:, _COL_S2].set(sb)
    wpack = wpack.at[:, _COL_T2].set(tb)
    wpack = wpack.at[:, _COL_WRT].set(p["reg_w"][0, :TUMOR_HIDDEN])
    wpack = wpack.at[:, _COL_WRC].set(p["reg_w"][0, TUMOR_HIDDEN:])
    return dict(scal=scal, w2lane=w2lane, wpack=wpack)


def multimodal_forward(ops, images, clinical):
    """images: (B, 1, 16, 16, 16) NCDHW f32; clinical: (B, 8) f32  ->  (B, 1) f32."""
    B = images.shape[0]
    L = K2 * Q2 * B                     # lane width (128 for B=2)
    # TODO(synk): for large B, add a batch grid axis (dimension_semantics="parallel"
    # to use v7x's two TensorCores) and cap the per-block im2col at ~8-16 MiB for
    # v7x's 64 MiB VMEM; at B=2 a single block is optimal.
    x1 = _prep_image(images)                            # (K1, P1, L)
    clin_lane = jnp.tile(clinical.T, (1, L // B))       # (F0, L), lane j <-> sample j%B

    out = pl.pallas_call(
        functools.partial(_multimodal_kernel, batch=B),
        out_shape=jax.ShapeDtypeStruct((1, L), jnp.float32),
        in_specs=[
            pl.BlockSpec(memory_space=pltpu.MemorySpace.VMEM),   # x1 (im2col image)
            pl.BlockSpec(memory_space=pltpu.MemorySpace.VMEM),   # clinical (lane-tiled)
            pl.BlockSpec(memory_space=pltpu.MemorySpace.SMEM),   # folded scalar weights
            pl.BlockSpec(memory_space=pltpu.MemorySpace.VMEM),   # lane-expanded conv2 w
            pl.BlockSpec(memory_space=pltpu.MemorySpace.VMEM),   # packed dense weights
        ],
        out_specs=pl.BlockSpec(memory_space=pltpu.MemorySpace.VMEM),
    )(x1, clin_lane, ops["scal"], ops["w2lane"], ops["wpack"])
    return out[:, :B].T                                 # (B, 1)


# ------------------------------ params (torch layouts) --------------------------
def init_params(key):
    def w_init(k, shape):
        return 0.1 * jax.random.normal(k, shape, jnp.float32)

    ks = iter(jax.random.split(key, 16))
    p = {}
    p["conv1_w"] = w_init(next(ks), (C1, IN_CH, 2, 2, 2))
    p["conv1_b"] = w_init(next(ks), (C1,))
    p["conv2_w"] = w_init(next(ks), (C2, C1, 2, 2, 2))
    p["conv2_b"] = w_init(next(ks), (C2,))
    for name, n in (("bn1", C1), ("bn2", C2)):
        p[f"{name}_gamma"] = jnp.ones((n,), jnp.float32)
        p[f"{name}_beta"] = jnp.zeros((n,), jnp.float32)
        p[f"{name}_mean"] = jnp.zeros((n,), jnp.float32)
        p[f"{name}_var"] = jnp.ones((n,), jnp.float32)
    p["dense_w"] = w_init(next(ks), (TUMOR_HIDDEN, TUMOR_LIN_IN))
    p["dense_b"] = w_init(next(ks), (TUMOR_HIDDEN,))
    clinical = []
    for (inf, outf) in CLINICAL_HIDDEN:
        w = w_init(next(ks), (outf, inf))
        b = w_init(next(ks), (outf,))
        clinical.append((w, b,
                         jnp.ones((outf,), jnp.float32),   # gamma
                         jnp.zeros((outf,), jnp.float32),  # beta
                         jnp.zeros((outf,), jnp.float32),  # running mean
                         jnp.ones((outf,), jnp.float32)))  # running var
    p["clinical"] = clinical
    p["reg_w"] = w_init(next(ks), (1, LINEAR_IN))
    p["reg_b"] = w_init(next(ks), (1,))
    return p


# ------------------------------ plain-JAX reference -----------------------------
def reference_forward(p, images, clinical):
    hi = jax.lax.Precision.HIGHEST

    def conv3d_k2s2(x, w, b):
        Bn, Ci, D, H, W = x.shape
        xp = x.reshape(Bn, Ci, D // 2, 2, H // 2, 2, W // 2, 2)
        xp = xp.transpose(0, 2, 4, 6, 1, 3, 5, 7).reshape(Bn, D // 2, H // 2, W // 2, -1)
        y = jnp.einsum("bdhwk,ck->bcdhw", xp, w.reshape(w.shape[0], -1), precision=hi)
        return y + b[None, :, None, None, None]

    def bn3d(x, g, bt, mu, var):
        s = g / jnp.sqrt(var + BN_EPS)
        return x * s[None, :, None, None, None] + (bt - mu * s)[None, :, None, None, None]

    def maxpool2(x):
        Bn, C, D, H, W = x.shape
        return x.reshape(Bn, C, D // 2, 2, H // 2, 2, W // 2, 2).max(axis=(3, 5, 7))

    x = conv3d_k2s2(images, p["conv1_w"], p["conv1_b"])
    x = jax.nn.relu(maxpool2(bn3d(x, p["bn1_gamma"], p["bn1_beta"],
                                  p["bn1_mean"], p["bn1_var"])))
    x = conv3d_k2s2(x, p["conv2_w"], p["conv2_b"])
    x = jax.nn.relu(maxpool2(bn3d(x, p["bn2_gamma"], p["bn2_beta"],
                                  p["bn2_mean"], p["bn2_var"])))
    x = x.reshape(x.shape[0], -1)
    x = jax.nn.relu(jnp.dot(x, p["dense_w"].T, precision=hi) + p["dense_b"])
    z = clinical
    for (w, b, g, bt, mu, var) in p["clinical"]:
        z = jax.nn.relu(jnp.dot(z, w.T, precision=hi) + b)
        s = g / jnp.sqrt(var + BN_EPS)
        z = z * s + (bt - mu * s)
    feat = jnp.concatenate([x, z], axis=1)
    return jnp.dot(feat, p["reg_w"].T, precision=hi) + p["reg_b"]


# ------------------------------------ main ---------------------------------------
if __name__ == "__main__":
    key = jax.random.PRNGKey(0)
    k_params, k_img, k_clin = jax.random.split(key, 3)

    params = init_params(k_params)
    # images in PyTorch NCDHW layout: (B, C, D, H, W) = (2, 1, 16, 16, 16)
    images = jax.random.normal(k_img, (2, IN_CH, SPATIAL, SPATIAL, SPATIAL), jnp.float32)
    clinical = jax.random.normal(k_clin, (2, CLINICAL_HIDDEN[0][0]), jnp.float32)

    # Fold / pack the weights ONCE (load time), then jit only the forward.
    ops = prepare_operands(params, batch=images.shape[0])

    fwd = jax.jit(multimodal_forward)
    out = jax.block_until_ready(fwd(ops, images, clinical))
    assert out.shape == (2, 1), out.shape

    ref = jax.block_until_ready(reference_forward(params, images, clinical))
    # Tolerance allows for a possible bf16-pass decomposition of the in-kernel f32 MXU
    # dots; everything else (conv stages, reductions, regressor) is exact f32 VPU/XLU.
    assert jnp.allclose(out, ref, atol=2e-3, rtol=1e-2), (out, ref)
    print("KERNEL_OK")
</pallas_src>

<mosaic_0001>
module attributes {stable_mosaic.version = 11 : i64} {
  func.func @_multimodal_kernel(%arg0: memref<8x8x128xf32, #tpu.memory_space<vmem>>, %arg1: memref<8x128xf32, #tpu.memory_space<vmem>>, %arg2: memref<41xf32, #tpu.memory_space<smem>>, %arg3: memref<4x4x128xf32, #tpu.memory_space<vmem>>, %arg4: memref<32x64xf32, #tpu.memory_space<vmem>>, %arg5: memref<1x128xf32, #tpu.memory_space<vmem>>) attributes {dimension_semantics = [], scalar_prefetch = 0 : i64, scratch_operands = 0 : i64, tpu.core_type = #tpu.core_type<tc>} {
    %c0 = arith.constant 0 : index
    %c0_0 = arith.constant 0 : index
    %c0_1 = arith.constant 0 : index
    %0 = vector.load %arg0[%c0, %c0_0, %c0_1] : memref<8x8x128xf32, #tpu.memory_space<vmem>>, vector<8x8x128xf32>
    %c0_2 = arith.constant 0 : index
    %1 = memref.load %arg2[%c0_2] : memref<41xf32, #tpu.memory_space<smem>>
    %2 = vector.extract_strided_slice %0 {offsets = [0, 0, 0], sizes = [1, 8, 128], strides = [1, 1, 1]} : vector<8x8x128xf32> to vector<1x8x128xf32>
    %3 = vector.shape_cast %2 : vector<1x8x128xf32> to vector<8x128xf32>
    %4 = vector.broadcast %1 : f32 to vector<8x128xf32>
    %5 = arith.mulf %4, %3 : vector<8x128xf32>
    %c1 = arith.constant 1 : index
    %6 = memref.load %arg2[%c1] : memref<41xf32, #tpu.memory_space<smem>>
    %7 = vector.extract_strided_slice %0 {offsets = [1, 0, 0], sizes = [1, 8, 128], strides = [1, 1, 1]} : vector<8x8x128xf32> to vector<1x8x128xf32>
    %8 = vector.shape_cast %7 : vector<1x8x128xf32> to vector<8x128xf32>
    %9 = vector.broadcast %6 : f32 to vector<8x128xf32>
    %10 = arith.mulf %9, %8 : vector<8x128xf32>
    %c2 = arith.constant 2 : index
    %11 = memref.load %arg2[%c2] : memref<41xf32, #tpu.memory_space<smem>>
    %12 = vector.extract_strided_slice %0 {offsets = [2, 0, 0], sizes = [1, 8, 128], strides = [1, 1, 1]} : vector<8x8x128xf32> to vector<1x8x128xf32>
    %13 = vector.shape_cast %12 : vector<1x8x128xf32> to vector<8x128xf32>
    %14 = vector.broadcast %11 : f32 to vector<8x128xf32>
    %15 = arith.mulf %14, %13 : vector<8x128xf32>
    %c3 = arith.constant 3 : index
    %16 = memref.load %arg2[%c3] : memref<41xf32, #tpu.memory_space<smem>>
    %17 = vector.extract_strided_slice %0 {offsets = [3, 0, 0], sizes = [1, 8, 128], strides = [1, 1, 1]} : vector<8x8x128xf32> to vector<1x8x128xf32>
    %18 = vector.shape_cast %17 : vector<1x8x128xf32> to vector<8x128xf32>
    %19 = vector.broadcast %16 : f32 to vector<8x128xf32>
    %20 = arith.mulf %19, %18 : vector<8x128xf32>
    %c4 = arith.constant 4 : index
    %21 = memref.load %arg2[%c4] : memref<41xf32, #tpu.memory_space<smem>>
    %22 = vector.extract_strided_slice %0 {offsets = [4, 0, 0], sizes = [1, 8, 128], strides = [1, 1, 1]} : vector<8x8x128xf32> to vector<1x8x128xf32>
    %23 = vector.shape_cast %22 : vector<1x8x128xf32> to vector<8x128xf32>
    %24 = vector.broadcast %21 : f32 to vector<8x128xf32>
    %25 = arith.mulf %24, %23 : vector<8x128xf32>
    %c5 = arith.constant 5 : index
    %26 = memref.load %arg2[%c5] : memref<41xf32, #tpu.memory_space<smem>>
    %27 = vector.extract_strided_slice %0 {offsets = [5, 0, 0], sizes = [1, 8, 128], strides = [1, 1, 1]} : vector<8x8x128xf32> to vector<1x8x128xf32>
    %28 = vector.shape_cast %27 : vector<1x8x128xf32> to vector<8x128xf32>
    %29 = vector.broadcast %26 : f32 to vector<8x128xf32>
    %30 = arith.mulf %29, %28 : vector<8x128xf32>
    %c6 = arith.constant 6 : index
    %31 = memref.load %arg2[%c6] : memref<41xf32, #tpu.memory_space<smem>>
    %32 = vector.extract_strided_slice %0 {offsets = [6, 0, 0], sizes = [1, 8, 128], strides = [1, 1, 1]} : vector<8x8x128xf32> to vector<1x8x128xf32>
    %33 = vector.shape_cast %32 : vector<1x8x128xf32> to vector<8x128xf32>
    %34 = vector.broadcast %31 : f32 to vector<8x128xf32>
    %35 = arith.mulf %34, %33 : vector<8x128xf32>
    %c7 = arith.constant 7 : index
    %36 = memref.load %arg2[%c7] : memref<41xf32, #tpu.memory_space<smem>>
    %37 = vector.extract_strided_slice %0 {offsets = [7, 0, 0], sizes = [1, 8, 128], strides = [1, 1, 1]} : vector<8x8x128xf32> to vector<1x8x128xf32>
    %38 = vector.shape_cast %37 : vector<1x8x128xf32> to vector<8x128xf32>
    %39 = vector.broadcast %36 : f32 to vector<8x128xf32>
    %40 = arith.mulf %39, %38 : vector<8x128xf32>
    %41 = arith.addf %5, %10 : vector<8x128xf32>
    %42 = arith.addf %15, %20 : vector<8x128xf32>
    %43 = arith.addf %25, %30 : vector<8x128xf32>
    %44 = arith.addf %35, %40 : vector<8x128xf32>
    %45 = arith.addf %41, %42 : vector<8x128xf32>
    %46 = arith.addf %43, %44 : vector<8x128xf32>
    %47 = arith.addf %45, %46 : vector<8x128xf32>
    %c8 = arith.constant 8 : index
    %48 = memref.load %arg2[%c8] : memref<41xf32, #tpu.memory_space<smem>>
    %49 = vector.broadcast %48 : f32 to vector<8x128xf32>
    %50 = arith.addf %47, %49 : vector<8x128xf32>
    %cst = arith.constant dense<0xFF800000> : vector<128xf32>
    %51 = vector.multi_reduction <maximumf>, %50, %cst [0] : vector<8x128xf32> to vector<128xf32>
    %52 = vector.shape_cast %51 : vector<128xf32> to vector<1x128xf32>
    %cst_3 = arith.constant 0.000000e+00 : f32
    %53 = vector.broadcast %cst_3 : f32 to vector<1x128xf32>
    %54 = arith.maximumf %52, %53 : vector<1x128xf32>
    %c9 = arith.constant 9 : index
    %55 = memref.load %arg2[%c9] : memref<41xf32, #tpu.memory_space<smem>>
    %56 = vector.extract_strided_slice %0 {offsets = [0, 0, 0], sizes = [1, 8, 128], strides = [1, 1, 1]} : vector<8x8x128xf32> to vector<1x8x128xf32>
    %57 = vector.shape_cast %56 : vector<1x8x128xf32> to vector<8x128xf32>
    %58 = vector.broadcast %55 : f32 to vector<8x128xf32>
    %59 = arith.mulf %58, %57 : vector<8x128xf32>
    %c10 = arith.constant 10 : index
    %60 = memref.load %arg2[%c10] : memref<41xf32, #tpu.memory_space<smem>>
    %61 = vector.extract_strided_slice %0 {offsets = [1, 0, 0], sizes = [1, 8, 128], strides = [1, 1, 1]} : vector<8x8x128xf32> to vector<1x8x128xf32>
    %62 = vector.shape_cast %61 : vector<1x8x128xf32> to vector<8x128xf32>
    %63 = vector.broadcast %60 : f32 to vector<8x128xf32>
    %64 = arith.mulf %63, %62 : vector<8x128xf32>
    %c11 = arith.constant 11 : index
    %65 = memref.load %arg2[%c11] : memref<41xf32, #tpu.memory_space<smem>>
    %66 = vector.extract_strided_slice %0 {offsets = [2, 0, 0], sizes = [1, 8, 128], strides = [1, 1, 1]} : vector<8x8x128xf32> to vector<1x8x128xf32>
    %67 = vector.shape_cast %66 : vector<1x8x128xf32> to vector<8x128xf32>
    %68 = vector.broadcast %65 : f32 to vector<8x128xf32>
    %69 = arith.mulf %68, %67 : vector<8x128xf32>
    %c12 = arith.constant 12 : index
    %70 = memref.load %arg2[%c12] : memref<41xf32, #tpu.memory_space<smem>>
    %71 = vector.extract_strided_slice %0 {offsets = [3, 0, 0], sizes = [1, 8, 128], strides = [1, 1, 1]} : vector<8x8x128xf32> to vector<1x8x128xf32>
    %72 = vector.shape_cast %71 : vector<1x8x128xf32> to vector<8x128xf32>
    %73 = vector.broadcast %70 : f32 to vector<8x128xf32>
    %74 = arith.mulf %73, %72 : vector<8x128xf32>
    %c13 = arith.constant 13 : index
    %75 = memref.load %arg2[%c13] : memref<41xf32, #tpu.memory_space<smem>>
    %76 = vector.extract_strided_slice %0 {offsets = [4, 0, 0], sizes = [1, 8, 128], strides = [1, 1, 1]} : vector<8x8x128xf32> to vector<1x8x128xf32>
    %77 = vector.shape_cast %76 : vector<1x8x128xf32> to vector<8x128xf32>
    %78 = vector.broadcast %75 : f32 to vector<8x128xf32>
    %79 = arith.mulf %78, %77 : vector<8x128xf32>
    %c14 = arith.constant 14 : index
    %80 = memref.load %arg2[%c14] : memref<41xf32, #tpu.memory_space<smem>>
    %81 = vector.extract_strided_slice %0 {offsets = [5, 0, 0], sizes = [1, 8, 128], strides = [1, 1, 1]} : vector<8x8x128xf32> to vector<1x8x128xf32>
    %82 = vector.shape_cast %81 : vector<1x8x128xf32> to vector<8x128xf32>
    %83 = vector.broadcast %80 : f32 to vector<8x128xf32>
    %84 = arith.mulf %83, %82 : vector<8x128xf32>
    %c15 = arith.constant 15 : index
    %85 = memref.load %arg2[%c15] : memref<41xf32, #tpu.memory_space<smem>>
    %86 = vector.extract_strided_slice %0 {offsets = [6, 0, 0], sizes = [1, 8, 128], strides = [1, 1, 1]} : vector<8x8x128xf32> to vector<1x8x128xf32>
    %87 = vector.shape_cast %86 : vector<1x8x128xf32> to vector<8x128xf32>
    %88 = vector.broadcast %85 : f32 to vector<8x128xf32>
    %89 = arith.mulf %88, %87 : vector<8x128xf32>
    %c16 = arith.constant 16 : index
    %90 = memref.load %arg2[%c16] : memref<41xf32, #tpu.memory_space<smem>>
    %91 = vector.extract_strided_slice %0 {offsets = [7, 0, 0], sizes = [1, 8, 128], strides = [1, 1, 1]} : vector<8x8x128xf32> to vector<1x8x128xf32>
    %92 = vector.shape_cast %91 : vector<1x8x128xf32> to vector<8x128xf32>
    %93 = vector.broadcast %90 : f32 to vector<8x128xf32>
    %94 = arith.mulf %93, %92 : vector<8x128xf32>
    %95 = arith.addf %59, %64 : vector<8x128xf32>
    %96 = arith.addf %69, %74 : vector<8x128xf32>
    %97 = arith.addf %79, %84 : vector<8x128xf32>
    %98 = arith.addf %89, %94 : vector<8x128xf32>
    %99 = arith.addf %95, %96 : vector<8x128xf32>
    %100 = arith.addf %97, %98 : vector<8x128xf32>
    %101 = arith.addf %99, %100 : vector<8x128xf32>
    %c17 = arith.constant 17 : index
    %102 = memref.load %arg2[%c17] : memref<41xf32, #tpu.memory_space<smem>>
    %103 = vector.broadcast %102 : f32 to vector<8x128xf32>
    %104 = arith.addf %101, %103 : vector<8x128xf32>
    %cst_4 = arith.constant dense<0xFF800000> : vector<128xf32>
    %105 = vector.multi_reduction <maximumf>, %104, %cst_4 [0] : vector<8x128xf32> to vector<128xf32>
    %106 = vector.shape_cast %105 : vector<128xf32> to vector<1x128xf32>
    %cst_5 = arith.constant 0.000000e+00 : f32
    %107 = vector.broadcast %cst_5 : f32 to vector<1x128xf32>
    %108 = arith.maximumf %106, %107 : vector<1x128xf32>
    %c18 = arith.constant 18 : index
    %109 = memref.load %arg2[%c18] : memref<41xf32, #tpu.memory_space<smem>>
    %110 = vector.extract_strided_slice %0 {offsets = [0, 0, 0], sizes = [1, 8, 128], strides = [1, 1, 1]} : vector<8x8x128xf32> to vector<1x8x128xf32>
    %111 = vector.shape_cast %110 : vector<1x8x128xf32> to vector<8x128xf32>
    %112 = vector.broadcast %109 : f32 to vector<8x128xf32>
    %113 = arith.mulf %112, %111 : vector<8x128xf32>
    %c19 = arith.constant 19 : index
    %114 = memref.load %arg2[%c19] : memref<41xf32, #tpu.memory_space<smem>>
    %115 = vector.extract_strided_slice %0 {offsets = [1, 0, 0], sizes = [1, 8, 128], strides = [1, 1, 1]} : vector<8x8x128xf32> to vector<1x8x128xf32>
    %116 = vector.shape_cast %115 : vector<1x8x128xf32> to vector<8x128xf32>
    %117 = vector.broadcast %114 : f32 to vector<8x128xf32>
    %118 = arith.mulf %117, %116 : vector<8x128xf32>
    %c20 = arith.constant 20 : index
    %119 = memref.load %arg2[%c20] : memref<41xf32, #tpu.memory_space<smem>>
    %120 = vector.extract_strided_slice %0 {offsets = [2, 0, 0], sizes = [1, 8, 128], strides = [1, 1, 1]} : vector<8x8x128xf32> to vector<1x8x128xf32>
    %121 = vector.shape_cast %120 : vector<1x8x128xf32> to vector<8x128xf32>
    %122 = vector.broadcast %119 : f32 to vector<8x128xf32>
    %123 = arith.mulf %122, %121 : vector<8x128xf32>
    %c21 = arith.constant 21 : index
    %124 = memref.load %arg2[%c21] : memref<41xf32, #tpu.memory_space<smem>>
    %125 = vector.extract_strided_slice %0 {offsets = [3, 0, 0], sizes = [1, 8, 128], strides = [1, 1, 1]} : vector<8x8x128xf32> to vector<1x8x128xf32>
    %126 = vector.shape_cast %125 : vector<1x8x128xf32> to vector<8x128xf32>
    %127 = vector.broadcast %124 : f32 to vector<8x128xf32>
    %128 = arith.mulf %127, %126 : vector<8x128xf32>
    %c22 = arith.constant 22 : index
    %129 = memref.load %arg2[%c22] : memref<41xf32, #tpu.memory_space<smem>>
    %130 = vector.extract_strided_slice %0 {offsets = [4, 0, 0], sizes = [1, 8, 128], strides = [1, 1, 1]} : vector<8x8x128xf32> to vector<1x8x128xf32>
    %131 = vector.shape_cast %130 : vector<1x8x128xf32> to vector<8x128xf32>
    %132 = vector.broadcast %129 : f32 to vector<8x128xf32>
    %133 = arith.mulf %132, %131 : vector<8x128xf32>
    %c23 = arith.constant 23 : index
    %134 = memref.load %arg2[%c23] : memref<41xf32, #tpu.memory_space<smem>>
    %135 = vector.extract_strided_slice %0 {offsets = [5, 0, 0], sizes = [1, 8, 128], strides = [1, 1, 1]} : vector<8x8x128xf32> to vector<1x8x128xf32>
    %136 = vector.shape_cast %135 : vector<1x8x128xf32> to vector<8x128xf32>
    %137 = vector.broadcast %134 : f32 to vector<8x128xf32>
    %138 = arith.mulf %137, %136 : vector<8x128xf32>
    %c24 = arith.constant 24 : index
    %139 = memref.load %arg2[%c24] : memref<41xf32, #tpu.memory_space<smem>>
    %140 = vector.extract_strided_slice %0 {offsets = [6, 0, 0], sizes = [1, 8, 128], strides = [1, 1, 1]} : vector<8x8x128xf32> to vector<1x8x128xf32>
    %141 = vector.shape_cast %140 : vector<1x8x128xf32> to vector<8x128xf32>
    %142 = vector.broadcast %139 : f32 to vector<8x128xf32>
    %143 = arith.mulf %142, %141 : vector<8x128xf32>
    %c25 = arith.constant 25 : index
    %144 = memref.load %arg2[%c25] : memref<41xf32, #tpu.memory_space<smem>>
    %145 = vector.extract_strided_slice %0 {offsets = [7, 0, 0], sizes = [1, 8, 128], strides = [1, 1, 1]} : vector<8x8x128xf32> to vector<1x8x128xf32>
    %146 = vector.shape_cast %145 : vector<1x8x128xf32> to vector<8x128xf32>
    %147 = vector.broadcast %144 : f32 to vector<8x128xf32>
    %148 = arith.mulf %147, %146 : vector<8x128xf32>
    %149 = arith.addf %113, %118 : vector<8x128xf32>
    %150 = arith.addf %123, %128 : vector<8x128xf32>
    %151 = arith.addf %133, %138 : vector<8x128xf32>
    %152 = arith.addf %143, %148 : vector<8x128xf32>
    %153 = arith.addf %149, %150 : vector<8x128xf32>
    %154 = arith.addf %151, %152 : vector<8x128xf32>
    %155 = arith.addf %153, %154 : vector<8x128xf32>
    %c26 = arith.constant 26 : index
    %156 = memref.load %arg2[%c26] : memref<41xf32, #tpu.memory_space<smem>>
    %157 = vector.broadcast %156 : f32 to vector<8x128xf32>
    %158 = arith.addf %155, %157 : vector<8x128xf32>
    %cst_6 = arith.constant dense<0xFF800000> : vector<128xf32>
    %159 = vector.multi_reduction <maximumf>, %158, %cst_6 [0] : vector<8x128xf32> to vector<128xf32>
    %160 = vector.shape_cast %159 : vector<128xf32> to vector<1x128xf32>
    %cst_7 = arith.constant 0.000000e+00 : f32
    %161 = vector.broadcast %cst_7 : f32 to vector<1x128xf32>
    %162 = arith.maximumf %160, %161 : vector<1x128xf32>
    %c27 = arith.constant 27 : index
    %163 = memref.load %arg2[%c27] : memref<41xf32, #tpu.memory_space<smem>>
    %164 = vector.extract_strided_slice %0 {offsets = [0, 0, 0], sizes = [1, 8, 128], strides = [1, 1, 1]} : vector<8x8x128xf32> to vector<1x8x128xf32>
    %165 = vector.shape_cast %164 : vector<1x8x128xf32> to vector<8x128xf32>
    %166 = vector.broadcast %163 : f32 to vector<8x128xf32>
    %167 = arith.mulf %166, %165 : vector<8x128xf32>
    %c28 = arith.constant 28 : index
    %168 = memref.load %arg2[%c28] : memref<41xf32, #tpu.memory_space<smem>>
    %169 = vector.extract_strided_slice %0 {offsets = [1, 0, 0], sizes = [1, 8, 128], strides = [1, 1, 1]} : vector<8x8x128xf32> to vector<1x8x128xf32>
    %170 = vector.shape_cast %169 : vector<1x8x128xf32> to vector<8x128xf32>
    %171 = vector.broadcast %168 : f32 to vector<8x128xf32>
    %172 = arith.mulf %171, %170 : vector<8x128xf32>
    %c29 = arith.constant 29 : index
    %173 = memref.load %arg2[%c29] : memref<41xf32, #tpu.memory_space<smem>>
    %174 = vector.extract_strided_slice %0 {offsets = [2, 0, 0], sizes = [1, 8, 128], strides = [1, 1, 1]} : vector<8x8x128xf32> to vector<1x8x128xf32>
    %175 = vector.shape_cast %174 : vector<1x8x128xf32> to vector<8x128xf32>
    %176 = vector.broadcast %173 : f32 to vector<8x128xf32>
    %177 = arith.mulf %176, %175 : vector<8x128xf32>
    %c30 = arith.constant 30 : index
    %178 = memref.load %arg2[%c30] : memref<41xf32, #tpu.memory_space<smem>>
    %179 = vector.extract_strided_slice %0 {offsets = [3, 0, 0], sizes = [1, 8, 128], strides = [1, 1, 1]} : vector<8x8x128xf32> to vector<1x8x128xf32>
    %180 = vector.shape_cast %179 : vector<1x8x128xf32> to vector<8x128xf32>
    %181 = vector.broadcast %178 : f32 to vector<8x128xf32>
    %182 = arith.mulf %181, %180 : vector<8x128xf32>
    %c31 = arith.constant 31 : index
    %183 = memref.load %arg2[%c31] : memref<41xf32, #tpu.memory_space<smem>>
    %184 = vector.extract_strided_slice %0 {offsets = [4, 0, 0], sizes = [1, 8, 128], strides = [1, 1, 1]} : vector<8x8x128xf32> to vector<1x8x128xf32>
    %185 = vector.shape_cast %184 : vector<1x8x128xf32> to vector<8x128xf32>
    %186 = vector.broadcast %183 : f32 to vector<8x128xf32>
    %187 = arith.mulf %186, %185 : vector<8x128xf32>
    %c32 = arith.constant 32 : index
    %188 = memref.load %arg2[%c32] : memref<41xf32, #tpu.memory_space<smem>>
    %189 = vector.extract_strided_slice %0 {offsets = [5, 0, 0], sizes = [1, 8, 128], strides = [1, 1, 1]} : vector<8x8x128xf32> to vector<1x8x128xf32>
    %190 = vector.shape_cast %189 : vector<1x8x128xf32> to vector<8x128xf32>
    %191 = vector.broadcast %188 : f32 to vector<8x128xf32>
    %192 = arith.mulf %191, %190 : vector<8x128xf32>
    %c33 = arith.constant 33 : index
    %193 = memref.load %arg2[%c33] : memref<41xf32, #tpu.memory_space<smem>>
    %194 = vector.extract_strided_slice %0 {offsets = [6, 0, 0], sizes = [1, 8, 128], strides = [1, 1, 1]} : vector<8x8x128xf32> to vector<1x8x128xf32>
    %195 = vector.shape_cast %194 : vector<1x8x128xf32> to vector<8x128xf32>
    %196 = vector.broadcast %193 : f32 to vector<8x128xf32>
    %197 = arith.mulf %196, %195 : vector<8x128xf32>
    %c34 = arith.constant 34 : index
    %198 = memref.load %arg2[%c34] : memref<41xf32, #tpu.memory_space<smem>>
    %199 = vector.extract_strided_slice %0 {offsets = [7, 0, 0], sizes = [1, 8, 128], strides = [1, 1, 1]} : vector<8x8x128xf32> to vector<1x8x128xf32>
    %200 = vector.shape_cast %199 : vector<1x8x128xf32> to vector<8x128xf32>
    %201 = vector.broadcast %198 : f32 to vector<8x128xf32>
    %202 = arith.mulf %201, %200 : vector<8x128xf32>
    %203 = arith.addf %167, %172 : vector<8x128xf32>
    %204 = arith.addf %177, %182 : vector<8x128xf32>
    %205 = arith.addf %187, %192 : vector<8x128xf32>
    %206 = arith.addf %197, %202 : vector<8x128xf32>
    %207 = arith.addf %203, %204 : vector<8x128xf32>
    %208 = arith.addf %205, %206 : vector<8x128xf32>
    %209 = arith.addf %207, %208 : vector<8x128xf32>
    %c35 = arith.constant 35 : index
    %210 = memref.load %arg2[%c35] : memref<41xf32, #tpu.memory_space<smem>>
    %211 = vector.broadcast %210 : f32 to vector<8x128xf32>
    %212 = arith.addf %209, %211 : vector<8x128xf32>
    %cst_8 = arith.constant dense<0xFF800000> : vector<128xf32>
    %213 = vector.multi_reduction <maximumf>, %212, %cst_8 [0] : vector<8x128xf32> to vector<128xf32>
    %214 = vector.shape_cast %213 : vector<128xf32> to vector<1x128xf32>
    %cst_9 = arith.constant 0.000000e+00 : f32
    %215 = vector.broadcast %cst_9 : f32 to vector<1x128xf32>
    %216 = arith.maximumf %214, %215 : vector<1x128xf32>
    %217 = tpu.concatenate %54, %108, %162, %216 in 0 : vector<1x128xf32>, vector<1x128xf32>, vector<1x128xf32>, vector<1x128xf32> -> vector<4x128xf32>
    %c0_10 = arith.constant 0 : index
    %c0_11 = arith.constant 0 : index
    %c0_12 = arith.constant 0 : index
    %218 = vector.load %arg3[%c0_10, %c0_11, %c0_12] : memref<4x4x128xf32, #tpu.memory_space<vmem>>, vector<1x4x128xf32>
    %219 = vector.shape_cast %218 : vector<1x4x128xf32> to vector<4x128xf32>
    %220 = arith.mulf %217, %219 : vector<4x128xf32>
    %cst_13 = arith.constant dense<0.000000e+00> : vector<128xf32>
    %221 = vector.multi_reduction <add>, %220, %cst_13 [0] : vector<4x128xf32> to vector<128xf32>
    %222 = vector.shape_cast %221 : vector<128xf32> to vector<1x128xf32>
    %c64_i32 = arith.constant 64 : i32
    %223 = tpu.dynamic_rotate %222 by %c64_i32 dim 1 : vector<1x128xf32>, i32 -> vector<1x128xf32>
    %224 = arith.addf %222, %223 : vector<1x128xf32>
    %c32_i32 = arith.constant 32 : i32
    %225 = tpu.dynamic_rotate %224 by %c32_i32 dim 1 : vector<1x128xf32>, i32 -> vector<1x128xf32>
    %226 = arith.addf %224, %225 : vector<1x128xf32>
    %c16_i32 = arith.constant 16 : i32
    %227 = tpu.dynamic_rotate %226 by %c16_i32 dim 1 : vector<1x128xf32>, i32 -> vector<1x128xf32>
    %228 = arith.addf %226, %227 : vector<1x128xf32>
    %c8_i32 = arith.constant 8 : i32
    %229 = tpu.dynamic_rotate %228 by %c8_i32 dim 1 : vector<1x128xf32>, i32 -> vector<1x128xf32>
    %230 = arith.maximumf %228, %229 : vector<1x128xf32>
    %c4_i32 = arith.constant 4 : i32
    %231 = tpu.dynamic_rotate %230 by %c4_i32 dim 1 : vector<1x128xf32>, i32 -> vector<1x128xf32>
    %232 = arith.maximumf %230, %231 : vector<1x128xf32>
    %c2_i32 = arith.constant 2 : i32
    %233 = tpu.dynamic_rotate %232 by %c2_i32 dim 1 : vector<1x128xf32>, i32 -> vector<1x128xf32>
    %234 = arith.maximumf %232, %233 : vector<1x128xf32>
    %c36 = arith.constant 36 : index
    %235 = memref.load %arg2[%c36] : memref<41xf32, #tpu.memory_space<smem>>
    %236 = vector.broadcast %235 : f32 to vector<1x128xf32>
    %237 = arith.addf %234, %236 : vector<1x128xf32>
    %cst_14 = arith.constant 0.000000e+00 : f32
    %238 = vector.broadcast %cst_14 : f32 to vector<1x128xf32>
    %239 = arith.maximumf %237, %238 : vector<1x128xf32>
    %c1_15 = arith.constant 1 : index
    %c0_16 = arith.constant 0 : index
    %c0_17 = arith.constant 0 : index
    %240 = vector.load %arg3[%c1_15, %c0_16, %c0_17] : memref<4x4x128xf32, #tpu.memory_space<vmem>>, vector<1x4x128xf32>
    %241 = vector.shape_cast %240 : vector<1x4x128xf32> to vector<4x128xf32>
    %242 = arith.mulf %217, %241 : vector<4x128xf32>
    %cst_18 = arith.constant dense<0.000000e+00> : vector<128xf32>
    %243 = vector.multi_reduction <add>, %242, %cst_18 [0] : vector<4x128xf32> to vector<128xf32>
    %244 = vector.shape_cast %243 : vector<128xf32> to vector<1x128xf32>
    %c64_i32_19 = arith.constant 64 : i32
    %245 = tpu.dynamic_rotate %244 by %c64_i32_19 dim 1 : vector<1x128xf32>, i32 -> vector<1x128xf32>
    %246 = arith.addf %244, %245 : vector<1x128xf32>
    %c32_i32_20 = arith.constant 32 : i32
    %247 = tpu.dynamic_rotate %246 by %c32_i32_20 dim 1 : vector<1x128xf32>, i32 -> vector<1x128xf32>
    %248 = arith.addf %246, %247 : vector<1x128xf32>
    %c16_i32_21 = arith.constant 16 : i32
    %249 = tpu.dynamic_rotate %248 by %c16_i32_21 dim 1 : vector<1x128xf32>, i32 -> vector<1x128xf32>
    %250 = arith.addf %248, %249 : vector<1x128xf32>
    %c8_i32_22 = arith.constant 8 : i32
    %251 = tpu.dynamic_rotate %250 by %c8_i32_22 dim 1 : vector<1x128xf32>, i32 -> vector<1x128xf32>
    %252 = arith.maximumf %250, %251 : vector<1x128xf32>
    %c4_i32_23 = arith.constant 4 : i32
    %253 = tpu.dynamic_rotate %252 by %c4_i32_23 dim 1 : vector<1x128xf32>, i32 -> vector<1x128xf32>
    %254 = arith.maximumf %252, %253 : vector<1x128xf32>
    %c2_i32_24 = arith.constant 2 : i32
    %255 = tpu.dynamic_rotate %254 by %c2_i32_24 dim 1 : vector<1x128xf32>, i32 -> vector<1x128xf32>
    %256 = arith.maximumf %254, %255 : vector<1x128xf32>
    %c37 = arith.constant 37 : index
    %257 = memref.load %arg2[%c37] : memref<41xf32, #tpu.memory_space<smem>>
    %258 = vector.broadcast %257 : f32 to vector<1x128xf32>
    %259 = arith.addf %256, %258 : vector<1x128xf32>
    %cst_25 = arith.constant 0.000000e+00 : f32
    %260 = vector.broadcast %cst_25 : f32 to vector<1x128xf32>
    %261 = arith.maximumf %259, %260 : vector<1x128xf32>
    %c2_26 = arith.constant 2 : index
    %c0_27 = arith.constant 0 : index
    %c0_28 = arith.constant 0 : index
    %262 = vector.load %arg3[%c2_26, %c0_27, %c0_28] : memref<4x4x128xf32, #tpu.memory_space<vmem>>, vector<1x4x128xf32>
    %263 = vector.shape_cast %262 : vector<1x4x128xf32> to vector<4x128xf32>
    %264 = arith.mulf %217, %263 : vector<4x128xf32>
    %cst_29 = arith.constant dense<0.000000e+00> : vector<128xf32>
    %265 = vector.multi_reduction <add>, %264, %cst_29 [0] : vector<4x128xf32> to vector<128xf32>
    %266 = vector.shape_cast %265 : vector<128xf32> to vector<1x128xf32>
    %c64_i32_30 = arith.constant 64 : i32
    %267 = tpu.dynamic_rotate %266 by %c64_i32_30 dim 1 : vector<1x128xf32>, i32 -> vector<1x128xf32>
    %268 = arith.addf %266, %267 : vector<1x128xf32>
    %c32_i32_31 = arith.constant 32 : i32
    %269 = tpu.dynamic_rotate %268 by %c32_i32_31 dim 1 : vector<1x128xf32>, i32 -> vector<1x128xf32>
    %270 = arith.addf %268, %269 : vector<1x128xf32>
    %c16_i32_32 = arith.constant 16 : i32
    %271 = tpu.dynamic_rotate %270 by %c16_i32_32 dim 1 : vector<1x128xf32>, i32 -> vector<1x128xf32>
    %272 = arith.addf %270, %271 : vector<1x128xf32>
    %c8_i32_33 = arith.constant 8 : i32
    %273 = tpu.dynamic_rotate %272 by %c8_i32_33 dim 1 : vector<1x128xf32>, i32 -> vector<1x128xf32>
    %274 = arith.maximumf %272, %273 : vector<1x128xf32>
    %c4_i32_34 = arith.constant 4 : i32
    %275 = tpu.dynamic_rotate %274 by %c4_i32_34 dim 1 : vector<1x128xf32>, i32 -> vector<1x128xf32>
    %276 = arith.maximumf %274, %275 : vector<1x128xf32>
    %c2_i32_35 = arith.constant 2 : i32
    %277 = tpu.dynamic_rotate %276 by %c2_i32_35 dim 1 : vector<1x128xf32>, i32 -> vector<1x128xf32>
    %278 = arith.maximumf %276, %277 : vector<1x128xf32>
    %c38 = arith.constant 38 : index
    %279 = memref.load %arg2[%c38] : memref<41xf32, #tpu.memory_space<smem>>
    %280 = vector.broadcast %279 : f32 to vector<1x128xf32>
    %281 = arith.addf %278, %280 : vector<1x128xf32>
    %cst_36 = arith.constant 0.000000e+00 : f32
    %282 = vector.broadcast %cst_36 : f32 to vector<1x128xf32>
    %283 = arith.maximumf %281, %282 : vector<1x128xf32>
    %c3_37 = arith.constant 3 : index
    %c0_38 = arith.constant 0 : index
    %c0_39 = arith.constant 0 : index
    %284 = vector.load %arg3[%c3_37, %c0_38, %c0_39] : memref<4x4x128xf32, #tpu.memory_space<vmem>>, vector<1x4x128xf32>
    %285 = vector.shape_cast %284 : vector<1x4x128xf32> to vector<4x128xf32>
    %286 = arith.mulf %217, %285 : vector<4x128xf32>
    %cst_40 = arith.constant dense<0.000000e+00> : vector<128xf32>
    %287 = vector.multi_reduction <add>, %286, %cst_40 [0] : vector<4x128xf32> to vector<128xf32>
    %288 = vector.shape_cast %287 : vector<128xf32> to vector<1x128xf32>
    %c64_i32_41 = arith.constant 64 : i32
    %289 = tpu.dynamic_rotate %288 by %c64_i32_41 dim 1 : vector<1x128xf32>, i32 -> vector<1x128xf32>
    %290 = arith.addf %288, %289 : vector<1x128xf32>
    %c32_i32_42 = arith.constant 32 : i32
    %291 = tpu.dynamic_rotate %290 by %c32_i32_42 dim 1 : vector<1x128xf32>, i32 -> vector<1x128xf32>
    %292 = arith.addf %290, %291 : vector<1x128xf32>
    %c16_i32_43 = arith.constant 16 : i32
    %293 = tpu.dynamic_rotate %292 by %c16_i32_43 dim 1 : vector<1x128xf32>, i32 -> vector<1x128xf32>
    %294 = arith.addf %292, %293 : vector<1x128xf32>
    %c8_i32_44 = arith.constant 8 : i32
    %295 = tpu.dynamic_rotate %294 by %c8_i32_44 dim 1 : vector<1x128xf32>, i32 -> vector<1x128xf32>
    %296 = arith.maximumf %294, %295 : vector<1x128xf32>
    %c4_i32_45 = arith.constant 4 : i32
    %297 = tpu.dynamic_rotate %296 by %c4_i32_45 dim 1 : vector<1x128xf32>, i32 -> vector<1x128xf32>
    %298 = arith.maximumf %296, %297 : vector<1x128xf32>
    %c2_i32_46 = arith.constant 2 : i32
    %299 = tpu.dynamic_rotate %298 by %c2_i32_46 dim 1 : vector<1x128xf32>, i32 -> vector<1x128xf32>
    %300 = arith.maximumf %298, %299 : vector<1x128xf32>
    %c39 = arith.constant 39 : index
    %301 = memref.load %arg2[%c39] : memref<41xf32, #tpu.memory_space<smem>>
    %302 = vector.broadcast %301 : f32 to vector<1x128xf32>
    %303 = arith.addf %300, %302 : vector<1x128xf32>
    %cst_47 = arith.constant 0.000000e+00 : f32
    %304 = vector.broadcast %cst_47 : f32 to vector<1x128xf32>
    %305 = arith.maximumf %303, %304 : vector<1x128xf32>
    %cst_48 = arith.constant 0.000000e+00 : f32
    %306 = vector.broadcast %cst_48 : f32 to vector<4x128xf32>
    %307 = tpu.concatenate %239, %261, %283, %305, %306 in 0 : vector<1x128xf32>, vector<1x128xf32>, vector<1x128xf32>, vector<1x128xf32>, vector<4x128xf32> -> vector<8x128xf32>
    %c0_49 = arith.constant 0 : index
    %c0_50 = arith.constant 0 : index
    %308 = vector.load %arg4[%c0_49, %c0_50] : memref<32x64xf32, #tpu.memory_space<vmem>>, vector<32x8xf32>
    %c0_51 = arith.constant 0 : index
    %c32_52 = arith.constant 32 : index
    %309 = vector.load %arg4[%c0_51, %c32_52] : memref<32x64xf32, #tpu.memory_space<vmem>>, vector<32x1xf32>
    %cst_53 = arith.constant dense<0.000000e+00> : vector<32x128xf32>
    %310 = tpu.matmul %308, %307, %cst_53 {dimension_numbers = #tpu.dot_dimension_numbers<[1], [0], [0], [1], [0, 0, 1, 1], [], []>} : vector<32x8xf32>, vector<8x128xf32>, vector<32x128xf32> -> vector<32x128xf32>
    %311 = vector.broadcast %309 : vector<32x1xf32> to vector<32x128xf32>
    %312 = arith.addf %310, %311 : vector<32x128xf32>
    %cst_54 = arith.constant 0.000000e+00 : f32
    %313 = vector.broadcast %cst_54 : f32 to vector<32x128xf32>
    %314 = arith.maximumf %312, %313 : vector<32x128xf32>
    %c0_55 = arith.constant 0 : index
    %c0_56 = arith.constant 0 : index
    %315 = vector.load %arg1[%c0_55, %c0_56] : memref<8x128xf32, #tpu.memory_space<vmem>>, vector<8x128xf32>
    %c0_57 = arith.constant 0 : index
    %c8_58 = arith.constant 8 : index
    %316 = vector.load %arg4[%c0_57, %c8_58] : memref<32x64xf32, #tpu.memory_space<vmem>>, vector<16x8xf32>
    %c0_59 = arith.constant 0 : index
    %c33_60 = arith.constant 33 : index
    %317 = vector.load %arg4[%c0_59, %c33_60] : memref<32x64xf32, #tpu.memory_space<vmem>>, vector<16x1xf32>
    %c0_61 = arith.constant 0 : index
    %c34_62 = arith.constant 34 : index
    %318 = vector.load %arg4[%c0_61, %c34_62] : memref<32x64xf32, #tpu.memory_space<vmem>>, vector<16x1xf32>
    %c0_63 = arith.constant 0 : index
    %c35_64 = arith.constant 35 : index
    %319 = vector.load %arg4[%c0_63, %c35_64] : memref<32x64xf32, #tpu.memory_space<vmem>>, vector<16x1xf32>
    %cst_65 = arith.constant dense<0.000000e+00> : vector<16x128xf32>
    %320 = tpu.matmul %316, %315, %cst_65 {dimension_numbers = #tpu.dot_dimension_numbers<[1], [0], [0], [1], [0, 0, 1, 1], [], []>} : vector<16x8xf32>, vector<8x128xf32>, vector<16x128xf32> -> vector<16x128xf32>
    %321 = vector.broadcast %317 : vector<16x1xf32> to vector<16x128xf32>
    %322 = arith.addf %320, %321 : vector<16x128xf32>
    %cst_66 = arith.constant 0.000000e+00 : f32
    %323 = vector.broadcast %cst_66 : f32 to vector<16x128xf32>
    %324 = arith.maximumf %322, %323 : vector<16x128xf32>
    %325 = vector.broadcast %318 : vector<16x1xf32> to vector<16x128xf32>
    %326 = arith.mulf %324, %325 : vector<16x128xf32>
    %327 = vector.broadcast %319 : vector<16x1xf32> to vector<16x128xf32>
    %328 = arith.addf %326, %327 : vector<16x128xf32>
    %c0_67 = arith.constant 0 : index
    %c16_68 = arith.constant 16 : index
    %329 = vector.load %arg4[%c0_67, %c16_68] : memref<32x64xf32, #tpu.memory_space<vmem>>, vector<32x16xf32>
    %c0_69 = arith.constant 0 : index
    %c36_70 = arith.constant 36 : index
    %330 = vector.load %arg4[%c0_69, %c36_70] : memref<32x64xf32, #tpu.memory_space<vmem>>, vector<32x1xf32>
    %c0_71 = arith.constant 0 : index
    %c37_72 = arith.constant 37 : index
    %331 = vector.load %arg4[%c0_71, %c37_72] : memref<32x64xf32, #tpu.memory_space<vmem>>, vector<32x1xf32>
    %c0_73 = arith.constant 0 : index
    %c38_74 = arith.constant 38 : index
    %332 = vector.load %arg4[%c0_73, %c38_74] : memref<32x64xf32, #tpu.memory_space<vmem>>, vector<32x1xf32>
    %cst_75 = arith.constant dense<0.000000e+00> : vector<32x128xf32>
    %333 = tpu.matmul %329, %328, %cst_75 {dimension_numbers = #tpu.dot_dimension_numbers<[1], [0], [0], [1], [0, 0, 1, 1], [], []>} : vector<32x16xf32>, vector<16x128xf32>, vector<32x128xf32> -> vector<32x128xf32>
    %334 = vector.broadcast %330 : vector<32x1xf32> to vector<32x128xf32>
    %335 = arith.addf %333, %334 : vector<32x128xf32>
    %cst_76 = arith.constant 0.000000e+00 : f32
    %336 = vector.broadcast %cst_76 : f32 to vector<32x128xf32>
    %337 = arith.maximumf %335, %336 : vector<32x128xf32>
    %338 = vector.broadcast %331 : vector<32x1xf32> to vector<32x128xf32>
    %339 = arith.mulf %337, %338 : vector<32x128xf32>
    %340 = vector.broadcast %332 : vector<32x1xf32> to vector<32x128xf32>
    %341 = arith.addf %339, %340 : vector<32x128xf32>
    %c0_77 = arith.constant 0 : index
    %c39_78 = arith.constant 39 : index
    %342 = vector.load %arg4[%c0_77, %c39_78] : memref<32x64xf32, #tpu.memory_space<vmem>>, vector<32x1xf32>
    %c0_79 = arith.constant 0 : index
    %c40 = arith.constant 40 : index
    %343 = vector.load %arg4[%c0_79, %c40] : memref<32x64xf32, #tpu.memory_space<vmem>>, vector<32x1xf32>
    %344 = vector.broadcast %342 : vector<32x1xf32> to vector<32x128xf32>
    %345 = arith.mulf %344, %314 : vector<32x128xf32>
    %cst_80 = arith.constant dense<0.000000e+00> : vector<128xf32>
    %346 = vector.multi_reduction <add>, %345, %cst_80 [0] : vector<32x128xf32> to vector<128xf32>
    %347 = vector.shape_cast %346 : vector<128xf32> to vector<1x128xf32>
    %348 = vector.broadcast %343 : vector<32x1xf32> to vector<32x128xf32>
    %349 = arith.mulf %348, %341 : vector<32x128xf32>
    %cst_81 = arith.constant dense<0.000000e+00> : vector<128xf32>
    %350 = vector.multi_reduction <add>, %349, %cst_81 [0] : vector<32x128xf32> to vector<128xf32>
    %351 = vector.shape_cast %350 : vector<128xf32> to vector<1x128xf32>
    %352 = arith.addf %347, %351 : vector<1x128xf32>
    %c40_82 = arith.constant 40 : index
    %353 = memref.load %arg2[%c40_82] : memref<41xf32, #tpu.memory_space<smem>>
    %354 = vector.broadcast %353 : f32 to vector<1x128xf32>
    %355 = arith.addf %352, %354 : vector<1x128xf32>
    %c0_83 = arith.constant 0 : index
    %c0_84 = arith.constant 0 : index
    %356 = vector.load %arg5[%c0_83, %c0_84] : memref<1x128xf32, #tpu.memory_space<vmem>>, vector<1x128xf32>
    tpu.vector_store %arg5[%c0_83, %c0_84], %355 {strides = array<i32>} : memref<1x128xf32, #tpu.memory_space<vmem>>, vector<1x128xf32>,
    return
  }
}

</mosaic_0001>

<bundles_post_ra>
// kernel: multimodal_forward.1
= control target key start
LH: loop header
LB: loop body
LE: loop exit
PB: predicated region body
PF: predicated region fallthrough
CT: control target
= control target key end

     0   :  { %10 = vsyncpa [#allocation3], 0  ;;  %s1304_s0 = inlined_call_operand.vmem [shape: f32[8,8,128], index: 0, kind: input, shape index: {}]   ;;  %s1305_s1 = inlined_call_operand.vmem [shape: f32[8,128], index: 1, kind: input, shape index: {}]   ;;  %s1306_s2 = inlined_call_operand.vmem [shape: f32[41], index: 2, kind: input, shape index: {}]   ;;  %s1307_s3 = inlined_call_operand.vmem [shape: f32[4,4,128], index: 3, kind: input, shape index: {}]   ;;  %s1308_s4 = inlined_call_operand.vmem [shape: f32[32,64], index: 4, kind: input, shape index: {}]   ;;  %s1309_s5 = inlined_call_operand.vmem [shape: f32[1,128], index: 5, kind: output, shape index: {}]  }
   0x1   :  { %s21_s20 = sshll.u32 %s1306_s2, 4  ;;  %s22_s20 = int_to_ptr.vmem [resolvable:$true] %s21_s20 }
   0x2   :  { %s958_s21 = scalar_lea.vmem %s22_s20, 16  ;;  %p963_p1 = scmp.lt.s32.totalorder %s22_s20, %s22_s20 }
   0x3   :  { %p959_p0 = scmp.ne.s32.totalorder %s22_s20, %s958_s21  ;;  %p964_p2 = scmp.lt.s32.totalorder %s958_s21, %s958_s21 }
   0x5   :  { %p965_p3 = por %p964_p2, %p963_p1 }
   0x7   :  { %p966_p4 = pnand %p965_p3, %p959_p0 }
   0x9   :  { %969 = shalt.err (!%p966_p4)
}
   0xa   :  { %s972_s22 = smov [#allocation2]  }
   0xb   :  { %24 = dma.vmem_to_smem %s22_s20, 16, %s972_s22, [#allocation3]  }
   0xc   :  { %970 = dma.done.wait [#allocation3], 16  }
   0xd   :  { %971 = vsyncadd [#allocation3], 4294967280 }
   0xe   :  { %32 = sfence }
   0xf   :  { %s41_s23 = sld [smem:[#allocation2]]  ;;  %s822_s24 = sld [smem:[#allocation2 + $0x1]]  ;;  %v1030_v0 = vld [vmem:[%s1304_s0] sm:$0xff]  ;;  %v1039_v1 = vld [vmem:[%s1304_s0 + $0x8] sm:$0xff]  ;;  %v1048_v2 = vld [vmem:[%s1304_s0 + $0x10] sm:$0xff]  ;;  %vm205_vm0 = vcmask 1040384  }
  0x10   :  { %s823_s25 = sld [smem:[#allocation2 + $0x2]]  ;;  %s824_s26 = sld [smem:[#allocation2 + $0x3]]  ;;  %v1053_v3 = vld [vmem:[%s1304_s0 + $0x18] sm:$0xff]  ;;  %v1062_v5 = vld [vmem:[%s1304_s0 + $0x20] sm:$0xff]  ;;  %v1067_v6 = vld [vmem:[%s1304_s0 + $0x28] sm:$0xff]  ;;  %vm207_vm1 = vcmask 1041408  }
  0x11   :  { %s1023_s27 = sld [smem:[#allocation2 + $0x4]]  ;;  %s1025_s2 = sld [smem:[#allocation2 + $0x5]]  ;;  %v1077_v9 = vld [vmem:[%s1304_s0 + $0x30] sm:$0xff]  ;;  %v1082_v10 = vld [vmem:[%s1304_s0 + $0x38] sm:$0xff]  ;;  %vm209_vm2 = vcmask 1042432   ;;  %vm213_vm3 = vcmask 1043456  }
  0x12   :  { %s1032_s30 = sld [smem:[#allocation2 + $0x6]]  ;;  %s1034_s6 = sld [smem:[#allocation2 + $0x7]]  ;;  %vm376_vm4 = vcmask 64512   ;;  %vm616_vm5 = vcmask 130048  }
  0x13   :  { %s1041_s9 = sld [smem:[#allocation2 + $0x8]]  ;;  %s1043_s10 = sld [smem:[#allocation2 + $0x9]] }
  0x14   :  { %s1055_s15 = sld [smem:[#allocation2 + $0xa]]  ;;  %s1057_s16 = sld [smem:[#allocation2 + $0xb]] }
  0x15   :  { %v42_v4 = vstv %s41_s23  ;;  %v45_v8 = vstv %s822_s24  ;;  %s1070_s21 = sld [smem:[#allocation2 + $0xc]]  ;;  %s1072_s22 = sld [smem:[#allocation2 + $0xd]] }
  0x16   :  { %v43_v7 = vmul.f32 %v42_v4, %v1030_v0  ;;  %v46_v11 = vmul.f32 %v45_v8, %v1039_v1  ;;  %v48_v12 = vstv %s823_s25  ;;  %v51_v13 = vstv %s824_s26  ;;  %s1085_s24 = sld [smem:[#allocation2 + $0xe]]  ;;  %s1087_s8 = sld [smem:[#allocation2 + $0xf]] }
  0x17   :  { %v49_v14 = vmul.f32 %v48_v12, %v1048_v2  ;;  %v52_v15 = vmul.f32 %v51_v13, %v1053_v3  ;;  %v54_v16 = vstv %s1023_s27  ;;  %v57_v17 = vstv %s1025_s2  ;;  %s1093_s11 = sld [smem:[#allocation2 + $0x10]]  ;;  %s1095_s0 = sld [smem:[#allocation2 + $0x11]] }
  0x18   :  { %v55_v18 = vmul.f32 %v54_v16, %v1062_v5  ;;  %v58_v19 = vmul.f32 %v57_v17, %v1067_v6  ;;  %v60_v20 = vstv %s1032_s30  ;;  %v63_v21 = vstv %s1034_s6  ;;  %s1101_s25 = sld [smem:[#allocation2 + $0x12]]  ;;  %s1103_s26 = sld [smem:[#allocation2 + $0x13]] }
  0x19   :  { %v61_v22 = vmul.f32 %v60_v20, %v1077_v9  ;;  %v64_v23 = vmul.f32 %v63_v21, %v1082_v10  ;;  %v65_v24 = vadd.f32 %v46_v11, %v43_v7  ;;  %v66_v25 = vadd.f32 %v52_v15, %v49_v14  ;;  %s1107_s27 = sld [smem:[#allocation2 + $0x14]]  ;;  %s1112_s2 = sld [smem:[#allocation2 + $0x15]] }
  0x1a   :  { %v67_v26 = vadd.f32 %v58_v19, %v55_v18  ;;  %v73_v27 = vstv %s1041_s9  ;;  %v83_v28 = vstv %s1043_s10  ;;  %v86_v29 = vstv %s1055_s15  ;;  %s1114_s30 = sld [smem:[#allocation2 + $0x16]]  ;;  %s1118_s6 = sld [smem:[#allocation2 + $0x17]] }
  0x1b   :  { %v68_v30 = vadd.f32 %v64_v23, %v61_v22  ;;  %v69_v31 = vadd.f32 %v66_v25, %v65_v24  ;;  %v84_v32 = vmul.f32 %v83_v28, %v1030_v0  ;;  %v87_v33 = vmul.f32 %v86_v29, %v1039_v1  ;;  %s1124_s9 = sld [smem:[#allocation2 + $0x18]]  ;;  %s1126_s10 = sld [smem:[#allocation2 + $0x19]] }
  0x1c   :  { %v89_v34 = vstv %s1057_s16  ;;  %v92_v35 = vstv %s1070_s21  ;;  %v95_v36 = vstv %s1072_s22  ;;  %v98_v37 = vstv %s1085_s24  ;;  %s1136_s12 = sld [smem:[#allocation2 + $0x1b]]  ;;  %s1141_s13 = sld [smem:[#allocation2 + $0x1a]] }
  0x1d   :  { %v70_v38 = vadd.f32 %v68_v30, %v67_v26  ;;  %v90_v39 = vmul.f32 %v89_v34, %v1048_v2  ;;  %v93_v40 = vmul.f32 %v92_v35, %v1053_v3  ;;  %v96_v41 = vmul.f32 %v95_v36, %v1062_v5  ;;  %s1143_s14 = sld [smem:[#allocation2 + $0x1c]]  ;;  %s1146_s15 = sld [smem:[#allocation2 + $0x1d]] }
  0x1e   :  { %v99_v42 = vmul.f32 %v98_v37, %v1067_v6  ;;  %v101_v43 = vstv %s1087_s8  ;;  %v104_v44 = vstv %s1093_s11  ;;  %v106_v45 = vadd.f32 %v87_v33, %v84_v32  ;;  %s1152_s16 = sld [smem:[#allocation2 + $0x1e]]  ;;  %s1154_s17 = sld [smem:[#allocation2 + $0x1f]] }
  0x1f   :  { %v71_v46 = vadd.f32 %v70_v38, %v69_v31  ;;  %v102_v47 = vmul.f32 %v101_v43, %v1077_v9  ;;  %v105_v48 = vmul.f32 %v104_v44, %v1082_v10  ;;  %v107_v49 = vadd.f32 %v93_v40, %v90_v39  ;;  %s1158_s18 = sld [smem:[#allocation2 + $0x20]]  ;;  %s1164_s19 = sld [smem:[#allocation2 + $0x21]] }
  0x20   :  { %v108_v50 = vadd.f32 %v99_v42, %v96_v41  ;;  %v114_v51 = vstv %s1095_s0  ;;  %v124_v52 = vstv %s1101_s25  ;;  %v127_v53 = vstv %s1103_s26  ;;  %s1166_s20 = sld [smem:[#allocation2 + $0x22]]  ;;  %s856_s21 = sld [smem:[#allocation2 + $0x23]] }
  0x21   :  { %v74_v54 = vadd.f32 %v73_v27, %v71_v46  ;;  %v109_v55 = vadd.f32 %v105_v48, %v102_v47  ;;  %v110_v56 = vadd.f32 %v107_v49, %v106_v45  ;;  %v125_v57 = vmul.f32 %v124_v52, %v1030_v0  ;;  %s875_s22 = sld [smem:[#allocation2 + $0x28]] }
  0x22   :  { %v128_v58 = vmul.f32 %v127_v53, %v1039_v1  ;;  %v130_v59 = vstv %s1107_s27  ;;  %v133_v60 = vstv %s1112_s2  ;;  %v136_v61 = vstv %s1114_s30  ;;  %s974_s2 = smov 32   ;;  %s975_s30 = smov 120  }
  0x23   :  { %v75_v62 = vrot.slane %v74_v54, 4  ;;  %v111_v63 = vadd.f32 %v109_v55, %v108_v50  ;;  %v131_v4 = vmul.f32 %v130_v59, %v1048_v2  ;;  %v134_v7 = vmul.f32 %v133_v60, %v1053_v3 }
  0x24   :  { %v137_v8 = vmul.f32 %v136_v61, %v1062_v5  ;;  %v139_v11 = vstv %s1118_s6  ;;  %v142_v12 = vstv %s1124_s9  ;;  %v145_v13 = vstv %s1126_s10  ;;  %s976_s9 = smov 16   ;;  %s978_s10 = smov 8  }
  0x25   :  { %v112_v14 = vadd.f32 %v111_v63, %v110_v56  ;;  %v140_v15 = vmul.f32 %v139_v11, %v1067_v6  ;;  %v143_v16 = vmul.f32 %v142_v12, %v1077_v9  ;;  %v146_v17 = vmul.f32 %v145_v13, %v1082_v10 }
  0x26   :  { %v147_v18 = vadd.f32 %v128_v58, %v125_v57  ;;  %v148_v19 = vadd.f32 %v134_v7, %v131_v4  ;;  %v76_v20 = vmax.f32 %v74_v54, %v75_v62  ;;  %v165_v23 = vstv %s1136_s12  ;;  %s979_s12 = smov 4  }
  0x27   :  { %v115_v21 = vadd.f32 %v114_v51, %v112_v14  ;;  %v149_v22 = vadd.f32 %v140_v15, %v137_v8  ;;  %v150_v24 = vadd.f32 %v146_v17, %v143_v16  ;;  %v155_v26 = vstv %s1141_s13  ;;  %v858_v17 = vld [vmem:[%s1307_s3 + $0x4] sm:$0xf]  ;;  %s982_s13 = smov 2  }
  0x28   :  { %v151_v25 = vadd.f32 %v148_v19, %v147_v18  ;;  %v168_v27 = vstv %s1143_s14  ;;  %v166_v29 = vmul.f32 %v165_v23, %v1030_v0  ;;  %v171_v31 = vstv %s1146_s15  ;;  %v860_v18 = vld [vmem:[%s1307_s3 + $0x8] sm:$0xf]  ;;  %s983_s14 = smov 112  }
  0x29   :  { %v116_v28 = vrot.slane %v115_v21, 4  ;;  %v169_v30 = vmul.f32 %v168_v27, %v1039_v1  ;;  %v152_v32 = vadd.f32 %v150_v24, %v149_v22  ;;  %v172_v33 = vmul.f32 %v171_v31, %v1048_v2 }
  0x2a   :  { %v174_v34 = vstv %s1152_s16  ;;  %v177_v35 = vstv %s1154_s17  ;;  %v77_v36 = vrot.slane %v76_v20, 2  ;;  %v180_v41 = vstv %s1158_s18 }
  0x2b   :  { %v117_v37 = vmax.f32 %v115_v21, %v116_v28  ;;  %v175_v38 = vmul.f32 %v174_v34, %v1053_v3  ;;  %v178_v39 = vmul.f32 %v177_v35, %v1062_v5  ;;  %v153_v40 = vadd.f32 %v152_v32, %v151_v25  ;;  %v862_v21 = vld [vmem:[%s1307_s3 + $0xc] sm:$0xf] }
  0x2c   :  { %v183_v42 = vstv %s1164_s19  ;;  %v186_v43 = vstv %s1166_s20  ;;  %v181_v1 = vmul.f32 %v180_v41, %v1067_v6  ;;  %v188_v46 = vadd.f32 %v169_v30, %v166_v29  ;;  %s857_s19 = sld [smem:[#allocation2 + $0x24]]  ;;  %s861_s20 = sld [smem:[#allocation2 + $0x26]] }
  0x2d   :  { %v118_v0 = vrot.slane %v117_v37, 2  ;;  %v184_v44 = vmul.f32 %v183_v42, %v1077_v9  ;;  %v156_v45 = vadd.f32 %v155_v26, %v153_v40  ;;  %v187_v2 = vmul.f32 %v186_v43, %v1082_v10 }
  0x2e   :  { %v189_v47 = vadd.f32 %v175_v38, %v172_v33  ;;  %v78_v48 = vmax.f32 %v76_v20, %v77_v36  ;;  %v190_v49 = vadd.f32 %v181_v1, %v178_v39  ;;  %v196_v54 = vstv %s856_s21  ;;  %v211_v20 = vld [vmem:[%s1307_s3] sm:$0xf]  ;;  %s973_s3 = smov 64   ;;  %s863_s21 = sld [smem:[#allocation2 + $0x27]] }
  0x2f   :  { %v119_v3 = vmax.f32 %v117_v37, %v118_v0  ;;  %v157_v50 = vrot.slane %v156_v45, 4  ;;  %v191_v5 = vadd.f32 %v187_v2, %v184_v44 }
  0x30   :  { %v192_v51 = vadd.f32 %v189_v47, %v188_v46  ;;  %v79_v55 = vrot.slane %v78_v48, 1 }
  0x31   :  { %v158_v52 = vmax.f32 %v156_v45, %v157_v50  ;;  %v193_v53 = vadd.f32 %v191_v5, %v190_v49  ;;  %v120_v56 = vrot.slane %v119_v3, 1 }
  0x32   :  { %v80_v59 = vmax.f32 %v78_v48, %v79_v55 }
  0x33   :  { %v159_v57 = vrot.slane %v158_v52, 2  ;;  %v194_v6 = vadd.f32 %v193_v53, %v192_v51  ;;  %v121_v60 = vmax.f32 %v119_v3, %v120_v56  ;;  %v474_v53 = vld [vmem:[%s1305_s1] sm:$0xff] }
  0x34   :  { %v81_v4 = vmax.f32 %v80_v59, 0.0  ;;  %898 = vmatprep.subr.mxu1 %v474_v53 }
  0x35   :  { %v160_v58 = vmax.f32 %v158_v52, %v159_v57  ;;  %v197_v9 = vadd.f32 %v196_v54, %v194_v6  ;;  %v122_v7 = vmax.f32 %v121_v60, 0.0  ;;  %v1210_v52 = vld [vmem:[%s1308_s4] sm:$0xff]  ;;  %899 = vmatpush3.msra.mxu1 %v474_v53 }
  0x36   :  { %892 = vmatprep.mubr.msk.f32.mxu0 %vm376_vm4, %v1210_v52 }
  0x37   :  { %v161_v10 = vrot.slane %v160_v58, 1  ;;  %v198_v61 = vrot.slane %v197_v9, 4  ;;  %v206_v14 = vsel %vm205_vm0, %v81_v4, %v122_v7 }
  0x39   :  { %v199_v62 = vmax.f32 %v197_v9, %v198_v61  ;;  %v162_v63 = vmax.f32 %v160_v58, %v161_v10  ;;  %v1221_v9 = vld [vmem:[%s1308_s4 + $0x8] sm:$0xff] }
  0x3b   :  { %v200_v8 = vrot.slane %v199_v62, 2  ;;  %v163_v12 = vmax.f32 %v162_v63, 0.0 }
  0x3d   :  { %v201_v11 = vmax.f32 %v199_v62, %v200_v8  ;;  %v208_v16 = vsel %vm207_vm1, %v206_v14, %v163_v12  ;;  %v977_v12 = vmov 33  }
  0x3e   :  { %935 = vset.pattern.permute.xlu0 %v977_v12  ;;  %936 = vset.pattern.permute.xlu1 %v977_v12 }
  0x3f   :  { %v202_v13 = vrot.slane %v201_v11, 1 }
  0x41   :  { %v203_v15 = vmax.f32 %v201_v11, %v202_v13 }
  0x43   :  { %v204_v19 = vmax.f32 %v203_v15, 0.0 }
  0x45   :  { %v210_v22 = vsel %vm209_vm2, %v208_v16, %v204_v19 }
  0x46   :  { %v245_v23 = vmul.f32 %v858_v17, %v210_v22  ;;  %v277_v24 = vmul.f32 %v860_v18, %v210_v22  ;;  %v212_v25 = vmul.f32 %v211_v20, %v210_v22  ;;  %v309_v26 = vmul.f32 %v862_v21, %v210_v22 }
  0x48   :  { %v246_v27 = vsel %vm213_vm3, %v245_v23, 0.0  ;;  %v278_v28 = vsel %vm213_vm3, %v277_v24, 0.0  ;;  %v214_v29 = vsel %vm213_vm3, %v212_v25, 0.0  ;;  %v310_v30 = vsel %vm213_vm3, %v309_v26, 0.0 }
  0x49   :  { %v247_v31 = vrot.slane %v246_v27, 4  ;;  %v279_v32 = vrot.slane %v278_v28, 4  ;;  %v215_v33 = vrot.slane %v214_v29, 4  ;;  %v311_v34 = vrot.slane %v310_v30, 4 }
  0x4b   :  { %v248_v35 = vadd.f32 %v247_v31, %v246_v27  ;;  %v280_v36 = vadd.f32 %v279_v32, %v278_v28  ;;  %v216_v37 = vadd.f32 %v215_v33, %v214_v29  ;;  %v312_v38 = vadd.f32 %v311_v34, %v310_v30 }
  0x4c   :  { %v980_v31 = vmov 34   ;;  %v981_v32 = vmov 35  }
  0x4d   :  { %v249_v39 = vrot.slane %v248_v35, 2  ;;  %v281_v40 = vrot.slane %v280_v36, 2  ;;  %v217_v41 = vrot.slane %v216_v37, 2  ;;  %v313_v42 = vrot.slane %v312_v38, 2 }
  0x4f   :  { %v250_v43 = vadd.f32 %v249_v39, %v248_v35  ;;  %v282_v0 = vadd.f32 %v281_v40, %v280_v36  ;;  %v218_v1 = vadd.f32 %v217_v41, %v216_v37  ;;  %v314_v44 = vadd.f32 %v313_v42, %v312_v38  ;;  %v1248_v41 = vld [vmem:[%s1308_s4 + $0x10] sm:$0xff] }
  0x50   :  { %v984_v42 = vmov 36  }
  0x51   :  { %v251_v45 = vrot.slane %v250_v43, 1  ;;  %v283_v2 = vrot.slane %v282_v0, 1  ;;  %v219_v46 = vrot.slane %v218_v1, 1  ;;  %v315_v47 = vrot.slane %v314_v44, 1 }
  0x53   :  { %v252_v48 = vadd.f32 %v251_v45, %v250_v43  ;;  %v220_v49 = vadd.f32 %v219_v46, %v218_v1  ;;  %v284_v3 = vadd.f32 %v283_v2, %v282_v0  ;;  %v316_v50 = vadd.f32 %v315_v47, %v314_v44  ;;  %v1255_v43 = vld [vmem:[%s1308_s4 + $0x18] sm:$0xff]  ;;  %s859_s4 = sld [smem:[#allocation2 + $0x25]] }
  0x54   :  { %v985_v0 = vmov 32   ;;  %v986_v44 = vmov 37  }
  0x55   :  { %253 = vrot.lane.b32.xlu0 %v252_v48, %s973_s3  ;;  %221 = vrot.lane.b32.xlu1 %v220_v49, %s973_s3 }
  0x59   :  { %285 = vrot.lane.b32.xlu0 %v284_v3, %s973_s3  ;;  %317 = vrot.lane.b32.xlu1 %v316_v50, %s973_s3 }
  0xc7   :  { %v254_v5 = vpop.permute.xlu0 %253  ;;  %v222_v51 = vpop.permute.xlu1 %221 }
  0xc8   :  { %v255_v54 = vadd.f32 %v254_v5, %v252_v48  ;;  %v223_v55 = vadd.f32 %v222_v51, %v220_v49  ;;  %v987_v5 = vmov 38  }
  0xca   :  { %256 = vrot.lane.b32.xlu0 %v255_v54, %s974_s2 }
  0xcb   :  { %v286_v56 = vpop.permute.xlu0 %285  ;;  %v318_v57 = vpop.permute.xlu1 %317 }
  0xcc   :  { %v287_v6 = vadd.f32 %v286_v56, %v284_v3  ;;  %v319_v58 = vadd.f32 %v318_v57, %v316_v50 }
  0xce   :  { %288 = vrot.lane.b32.xlu1 %v287_v6, %s974_s2  ;;  %224 = vrot.lane.b32.xlu0 %v223_v55, %s974_s2 }
  0xd2   :  { %320 = vrot.lane.b32.xlu1 %v319_v58, %s974_s2  ;;  %487 = vrot.lane.b32.xlu0 %v1210_v52, %s975_s30 }
  0xd6   :  { %489 = vrot.lane.b32.xlu1 %v1221_v9, %s975_s30 }
 0x13c   :  { %v257_v59 = vpop.permute.xlu0 %256 }
 0x13d   :  { %v258_v60 = vadd.f32 %v257_v59, %v255_v54  ;;  %v272_v59 = vstv %s859_s4 }
 0x13f   :  { %259 = vrot.lane.b32.xlu0 %v258_v60, %s976_s9 }
 0x140   :  { %v225_v10 = vpop.permute.xlu0 %224  ;;  %v289_v61 = vpop.permute.xlu1 %288 }
 0x141   :  { %v226_v62 = vadd.f32 %v225_v10, %v223_v55  ;;  %v290_v63 = vadd.f32 %v289_v61, %v287_v6  ;;  %v988_v6 = vmov 39  }
 0x143   :  { %227 = vrot.lane.b32.xlu0 %v226_v62, %s976_s9  ;;  %291 = vrot.lane.b32.xlu1 %v290_v63, %s976_s9 }
 0x144   :  { %v321_v4 = vpop.permute.xlu1 %320  ;;  %v488_v7 = vpop.permute.xlu0 %487 }
 0x145   :  { %v322_v8 = vadd.f32 %v321_v4, %v319_v58  ;;  %900 = vmatprep.mubr.msk.f32.mxu1 %vm376_vm4, %v488_v7  ;;  %v989_v58 = vmov 40  }
 0x147   :  { %323 = vrot.lane.b32.xlu1 %v322_v8, %s976_s9 }
 0x148   :  { %v490_v11 = vpop.permute.xlu1 %489 }
 0x149   :  { %901 = vmatmul.mubr.msk.f32.vlgmr.msra.gmra.mrb[0].mxu1 %vm376_vm4, %v490_v11 }
 0x1b1   :  { %v260_v13 = vpop.permute.xlu0 %259 }
 0x1b2   :  { %v261_v14 = vadd.f32 %v260_v13, %v258_v60 }
 0x1b4   :  { %262 = vrot.lane.b32.xlu0 %v261_v14, %s978_s10 }
 0x1b5   :  { %v228_v15 = vpop.permute.xlu0 %227  ;;  %v292_v16 = vpop.permute.xlu1 %291 }
 0x1b6   :  { %v229_v17 = vadd.f32 %v228_v15, %v226_v62  ;;  %v293_v18 = vadd.f32 %v292_v16, %v290_v63  ;;  %v304_v63 = vstv %s861_s20 }
 0x1b8   :  { %230 = vrot.lane.b32.xlu0 %v229_v17, %s978_s10  ;;  %294 = vrot.lane.b32.xlu1 %v293_v18, %s978_s10 }
 0x1b9   :  { %v324_v19 = vpop.permute.xlu1 %323 }
 0x1ba   :  { %v325_v20 = vadd.f32 %v324_v19, %v322_v8 }
 0x1bc   :  { %326 = vrot.lane.b32.xlu1 %v325_v20, %s978_s10 }
 0x21c   :  { %v902_v21 = vpop.f32.mrb[0].mxu1 }
 0x21d   :  { %v561_v22 = vpop.f32.mrb[1].mxu1 }
 0x226   :  { %v263_v23 = vpop.permute.xlu0 %262 }
 0x227   :  { %v264_v24 = vmax.f32 %v261_v14, %v263_v23  ;;  %v336_v14 = vstv %s863_s21 }
 0x229   :  { %265 = vrot.lane.b32.xlu0 %v264_v24, %s979_s12 }
 0x22a   :  { %v231_v25 = vpop.permute.xlu0 %230  ;;  %v295_v26 = vpop.permute.xlu1 %294 }
 0x22b   :  { %v232_v27 = vmax.f32 %v229_v17, %v231_v25  ;;  %v296_v28 = vmax.f32 %v293_v18, %v295_v26 }
 0x22d   :  { %233 = vrot.lane.b32.xlu0 %v232_v27, %s979_s12  ;;  %297 = vrot.lane.b32.xlu1 %v296_v28, %s979_s12 }
 0x22e   :  { %v327_v29 = vpop.permute.xlu1 %326 }
 0x22f   :  { %v328_v30 = vmax.f32 %v325_v20, %v327_v29 }
 0x231   :  { %479 = vperm.xlu0 %935, %v1210_v52   ;;  %329 = vrot.lane.b32.xlu1 %v328_v30, %s979_s12 }
 0x235   :  { %484 = vperm.xlu1 %936, %v1221_v9   ;;  %938 = vset.pattern.permute.xlu0 %v980_v31 }
 0x236   :  { %577 = vperm.xlu0 %938, %v1221_v9  }
 0x239   :  { %937 = vset.pattern.permute.xlu1 %v980_v31 }
 0x23a   :  { %573 = vperm.xlu1 %937, %v1210_v52   ;;  %940 = vset.pattern.permute.xlu0 %v984_v42 }
 0x23e   :  { %939 = vset.pattern.permute.xlu1 %v981_v32 }
 0x23f   :  { %583 = vperm.xlu1 %939, %v1210_v52  }
 0x243   :  { %587 = vperm.xlu1 %939, %v1221_v9  }
 0x247   :  { %941 = vset.pattern.permute.xlu1 %v984_v42 }
 0x29b   :  { %v266_v33 = vpop.permute.xlu0 %265 }
 0x29c   :  { %v1232_v34 = vmax.f32 %v264_v24, %v266_v33 }
 0x29e   :  { %268 = vrot.lane.b32.xlu0 %v1232_v34, %s982_s13 }
 0x29f   :  { %v234_v35 = vpop.permute.xlu0 %233  ;;  %v298_v36 = vpop.permute.xlu1 %297 }
 0x2a0   :  { %v1235_v37 = vmax.f32 %v232_v27, %v234_v35  ;;  %v1237_v38 = vmax.f32 %v296_v28, %v298_v36 }
 0x2a2   :  { %236 = vrot.lane.b32.xlu0 %v1235_v37, %s982_s13  ;;  %300 = vrot.lane.b32.xlu1 %v1237_v38, %s982_s13 }
 0x2a3   :  { %v330_v39 = vpop.permute.xlu1 %329 }
 0x2a4   :  { %v1241_v40 = vmax.f32 %v328_v30, %v330_v39 }
 0x2a6   :  { %332 = vrot.lane.b32.xlu1 %v1241_v40, %s982_s13  ;;  %608 = vrot.lane.b32.xlu0 %v1210_v52, %s983_s14 }
 0x2aa   :  { %610 = vrot.lane.b32.xlu1 %v1221_v9, %s983_s14  ;;  %612 = vrot.lane.b32.xlu0 %v1248_v41, %s983_s14 }
 0x2ae   :  { %614 = vrot.lane.b32.xlu1 %v1255_v43, %s983_s14  ;;  %593 = vperm.xlu0 %940, %v1210_v52  }
 0x2b0   :  { %v480_v45 = vpop.permute.xlu0 %479 }
 0x2b1   :  { %v562_v47 = vadd.f32 %v561_v22, %v480_v45 }
 0x2b2   :  { %597 = vperm.xlu1 %941, %v1221_v9   ;;  %942 = vset.pattern.permute.xlu0 %v985_v0 }
 0x2b3   :  { %358 = vperm.xlu0 %942, %v1210_v52   ;;  %v570_v50 = vmax.f32 %v562_v47, 0.0 }
 0x2b4   :  { %v485_v1 = vpop.permute.xlu1 %484 }
 0x2b5   :  { %v567_v2 = vadd.f32 %v902_v21, %v485_v1  ;;  %v578_v49 = vpop.permute.xlu0 %577 }
 0x2b6   :  { %601 = vperm.xlu1 %941, %v1248_v41  }
 0x2b7   :  { %945 = vset.pattern.permute.xlu0 %v986_v44  ;;  %v571_v48 = vmax.f32 %v567_v2, 0.0 }
 0x2b8   :  { %715 = vperm.xlu0 %945, %v1210_v52  }
 0x2b9   :  { %v574_v46 = vpop.permute.xlu1 %573  ;;  %v581_v51 = vmul.f32 %v578_v49, %v571_v48 }
 0x2ba   :  { %943 = vset.pattern.permute.xlu1 %v985_v0  ;;  %v580_v53 = vmul.f32 %v574_v46, %v570_v50 }
 0x2bb   :  { %363 = vperm.xlu1 %943, %v1221_v9  }
 0x2bc   :  { %723 = vperm.xlu0 %945, %v1248_v41  }
 0x2be   :  { %v584_v3 = vpop.permute.xlu1 %583 }
 0x2bf   :  { %944 = vset.pattern.permute.xlu1 %v984_v42  ;;  %v590_v55 = vadd.f32 %v584_v3, %v580_v53 }
 0x2c0   :  { %605 = vperm.xlu1 %944, %v1255_v43   ;;  %949 = vset.pattern.permute.xlu0 %v987_v5 }
 0x2c1   :  { %739 = vperm.xlu0 %949, %v1221_v9  }
 0x2c2   :  { %v588_v54 = vpop.permute.xlu1 %587 }
 0x2c3   :  { %v591_v56 = vadd.f32 %v588_v54, %v581_v51 }
 0x2c4   :  { %946 = vset.pattern.permute.xlu1 %v986_v44 }
 0x2c5   :  { %v913_v57 = vpack.c.bf16 %v591_v56, %v590_v55  ;;  %719 = vperm.xlu1 %946, %v1221_v9   ;;  %743 = vperm.xlu0 %949, %v1248_v41  }
 0x2c7   :  { %914 = vmatprep.subr.bf16.mxu1 %v913_v57 }
 0x2c8   :  { %916 = vmatpush3.bf16.msra.mxu1 %v913_v57 }
 0x2c9   :  { %947 = vset.pattern.permute.xlu1 %v985_v0  ;;  %747 = vperm.xlu0 %949, %v1255_v43  }
 0x2ca   :  { %368 = vperm.xlu1 %947, %v1248_v41  }
 0x2cd   :  { %954 = vset.pattern.permute.xlu0 %v988_v6 }
 0x2ce   :  { %948 = vset.pattern.permute.xlu1 %v987_v5  ;;  %759 = vperm.xlu0 %954, %v1221_v9  }
 0x2cf   :  { %735 = vperm.xlu1 %948, %v1210_v52  }
 0x2d2   :  { %767 = vperm.xlu0 %954, %v1255_v43  }
 0x2d3   :  { %950 = vset.pattern.permute.xlu1 %v985_v0 }
 0x2d4   :  { %373 = vperm.xlu1 %950, %v1255_v43  }
 0x2d6   :  { %957 = vset.pattern.permute.xlu0 %v989_v58 }
 0x2d8   :  { %951 = vset.pattern.permute.xlu1 %v986_v44 }
 0x2d9   :  { %727 = vperm.xlu1 %951, %v1255_v43  }
 0x2dd   :  { %952 = vset.pattern.permute.xlu1 %v988_v6 }
 0x2de   :  { %755 = vperm.xlu1 %952, %v1210_v52  }
 0x2e2   :  { %953 = vset.pattern.permute.xlu1 %v989_v58 }
 0x2e3   :  { %784 = vperm.xlu1 %953, %v1210_v52   ;;  %v240_v52 = vstv %s857_s19 }
 0x2e7   :  { %788 = vperm.xlu1 %953, %v1221_v9  }
 0x2eb   :  { %955 = vset.pattern.permute.xlu1 %v988_v6 }
 0x2ec   :  { %763 = vperm.xlu1 %955, %v1248_v41  }
 0x2f0   :  { %956 = vset.pattern.permute.xlu1 %v989_v58 }
 0x2f1   :  { %792 = vperm.xlu1 %956, %v1248_v41  }
 0x2f5   :  { %796 = vperm.xlu1 %956, %v1255_v43  }
 0x310   :  { %v269_v60 = vpop.permute.xlu0 %268 }
 0x311   :  { %v270_v10 = vmax.f32 %v1232_v34, %v269_v60 }
 0x313   :  { %v273_v61 = vadd.f32 %v272_v59, %v270_v10 }
 0x314   :  { %v237_v62 = vpop.permute.xlu0 %236  ;;  %v301_v4 = vpop.permute.xlu1 %300 }
 0x315   :  { %v238_v7 = vmax.f32 %v1235_v37, %v237_v62  ;;  %v302_v8 = vmax.f32 %v1237_v38, %v301_v4  ;;  %v274_v11 = vmax.f32 %v273_v61, 0.0 }
 0x317   :  { %v241_v12 = vadd.f32 %v240_v52, %v238_v7  ;;  %v305_v13 = vadd.f32 %v304_v63, %v302_v8  ;;  %v340_v20 = vrot.slane %v274_v11, 7 }
 0x318   :  { %v333_v15 = vpop.permute.xlu1 %332  ;;  %v609_v16 = vpop.permute.xlu0 %608 }
 0x319   :  { %v242_v17 = vmax.f32 %v241_v12, 0.0  ;;  %v306_v18 = vmax.f32 %v305_v13, 0.0  ;;  %v334_v19 = vmax.f32 %v1241_v40, %v333_v15  ;;  %907 = vmatprep.mubr.msk.f32.mxu1 %vm616_vm5, %v609_v16 }
 0x31b   :  { %v337_v21 = vadd.f32 %v336_v14, %v334_v19  ;;  %v343_v22 = vrot.slane %v306_v18, 6  ;;  %v348_v26 = vsel %vm205_vm0, %v242_v17, %v340_v20 }
 0x31c   :  { %v611_v23 = vpop.permute.xlu1 %610  ;;  %v613_v24 = vpop.permute.xlu0 %612 }
 0x31d   :  { %v338_v25 = vmax.f32 %v337_v21, 0.0  ;;  %908 = vmatmul.mubr.msk.f32.vlgmr.msra.gmra.mrb[2].mxu1 %vm616_vm5, %v611_v23  ;;  %v349_v29 = vsel %vm207_vm1, %v348_v26, %v343_v22 }
 0x31e   :  { %910 = vmatprep.mubr.msk.f32.mxu1 %vm616_vm5, %v613_v24 }
 0x31f   :  { %v346_v27 = vrot.slane %v338_v25, 5 }
 0x320   :  { %v615_v28 = vpop.permute.xlu1 %614 }
 0x321   :  { %911 = vmatmul.mubr.msk.f32.gmra.mrb[4].mxu1 %vm616_vm5, %v615_v28  ;;  %v350_v30 = vsel %vm209_vm2, %v349_v29, %v346_v27 }
 0x322   :  { %890 = vmatprep.subr.msk.mxu0 %vm213_vm3, %v350_v30 }
 0x323   :  { %891 = vmatpush3.msk.msra.mxu0 %vm213_vm3, %v350_v30 }
 0x324   :  { %893 = vmatmul.mubr.msk.f32.vlgmr.msra.gmra.mrb[0].mxu0 %vm376_vm4, %v1221_v9 }
 0x325   :  { %895 = vmatprep.mubr.msk.f32.mxu0 %vm376_vm4, %v1248_v41 }
 0x328   :  { %896 = vmatmul.mubr.msk.f32.gmra.mrb[2].mxu0 %vm376_vm4, %v1255_v43 }
 0x32d   :  { %v594_v38 = vpop.permute.xlu0 %593 }
 0x331   :  { %v598_v31 = vpop.permute.xlu1 %597 }
 0x332   :  { %v359_v40 = vpop.permute.xlu0 %358 }
 0x335   :  { %v602_v32 = vpop.permute.xlu1 %601 }
 0x337   :  { %v716_v0 = vpop.permute.xlu0 %715 }
 0x33a   :  { %v364_v33 = vpop.permute.xlu1 %363 }
 0x33b   :  { %v724_v9 = vpop.permute.xlu0 %723 }
 0x33f   :  { %v606_v34 = vpop.permute.xlu1 %605 }
 0x340   :  { %v740_v45 = vpop.permute.xlu0 %739 }
 0x344   :  { %v720_v35 = vpop.permute.xlu1 %719  ;;  %v744_v2 = vpop.permute.xlu0 %743 }
 0x348   :  { %v748_v53 = vpop.permute.xlu0 %747 }
 0x349   :  { %v369_v36 = vpop.permute.xlu1 %368 }
 0x34d   :  { %v760_v8 = vpop.permute.xlu0 %759 }
 0x34e   :  { %v736_v37 = vpop.permute.xlu1 %735 }
 0x353   :  { %v374_v39 = vpop.permute.xlu1 %373 }
 0x358   :  { %v728_v42 = vpop.permute.xlu1 %727 }
 0x35d   :  { %v756_v1 = vpop.permute.xlu1 %755 }
 0x362   :  { %v785_v44 = vpop.permute.xlu1 %784 }
 0x366   :  { %v789_v41 = vpop.permute.xlu1 %788 }
 0x36b   :  { %v764_v48 = vpop.permute.xlu1 %763 }
 0x370   :  { %v793_v60 = vpop.permute.xlu1 %792 }
 0x374   :  { %v797_v24 = vpop.permute.xlu1 %796 }
 0x3f0   :  { %v909_v46 = vpop.f32.mrb[2].mxu1 }
 0x3f1   :  { %v697_v43 = vadd.f32 %v909_v46, %v598_v31  ;;  %v691_v47 = vpop.f32.mrb[3].mxu1  ;;  %v768_v31 = vpop.permute.xlu0 %767  ;;  %v814_v46 = vstv %s875_s22 }
 0x3f2   :  { %v692_v49 = vadd.f32 %v691_v47, %v594_v38 }
 0x3f3   :  { %v711_v3 = vmax.f32 %v697_v43, 0.0 }
 0x3f4   :  { %v710_v50 = vmax.f32 %v692_v49, 0.0  ;;  %v912_v5 = vpop.f32.mrb[4].mxu1 }
 0x3f5   :  { %v731_v51 = vmul.f32 %v720_v35, %v711_v3  ;;  %v707_v54 = vadd.f32 %v912_v5, %v606_v34  ;;  %v701_v55 = vpop.f32.mrb[5].mxu1 }
 0x3f6   :  { %v730_v56 = vmul.f32 %v716_v0, %v710_v50  ;;  %v702_v57 = vadd.f32 %v701_v55, %v602_v32 }
 0x3f7   :  { %v751_v6 = vadd.f32 %v740_v45, %v731_v51  ;;  %v713_v58 = vmax.f32 %v707_v54, 0.0  ;;  %v894_v59 = vpop.f32.mrb[0].mxu0 }
 0x3f8   :  { %v750_v10 = vadd.f32 %v736_v37, %v730_v56  ;;  %v712_v61 = vmax.f32 %v702_v57, 0.0  ;;  %v457_v52 = vadd.f32 %v894_v59, %v364_v33  ;;  %v451_v62 = vpop.f32.mrb[1].mxu0 }
 0x3f9   :  { %v800_v63 = vmul.f32 %v789_v41, %v751_v6  ;;  %v733_v4 = vmul.f32 %v728_v42, %v713_v58  ;;  %v452_v7 = vadd.f32 %v451_v62, %v359_v40 }
 0x3fa   :  { %v732_v11 = vmul.f32 %v724_v9, %v712_v61  ;;  %v471_v12 = vmax.f32 %v457_v52, 0.0  ;;  %v799_v13 = vmul.f32 %v785_v44, %v750_v10 }
 0x3fb   :  { %v470_v14 = vmax.f32 %v452_v7, 0.0  ;;  %v897_v15 = vpop.f32.mrb[2].mxu0  ;;  %v753_v16 = vadd.f32 %v748_v53, %v733_v4 }
 0x3fc   :  { %v752_v17 = vadd.f32 %v744_v2, %v732_v11  ;;  %v803_v18 = vadd.f32 %v800_v63, %v799_v13  ;;  %v771_v19 = vmul.f32 %v760_v8, %v471_v12  ;;  %v467_v20 = vadd.f32 %v897_v15, %v374_v39  ;;  %v461_v21 = vpop.f32.mrb[3].mxu0 }
 0x3fd   :  { %v770_v22 = vmul.f32 %v756_v1, %v470_v14  ;;  %v462_v23 = vadd.f32 %v461_v21, %v369_v36  ;;  %v802_v30 = vmul.f32 %v797_v24, %v753_v16 }
 0x3fe   :  { %v801_v25 = vmul.f32 %v793_v60, %v752_v17  ;;  %v473_v27 = vmax.f32 %v467_v20, 0.0 }
 0x3ff   :  { %v774_v26 = vadd.f32 %v771_v19, %v770_v22  ;;  %v472_v28 = vmax.f32 %v462_v23, 0.0 }
 0x400   :  { %v804_v29 = vadd.f32 %v803_v18, %v801_v25  ;;  %v773_v34 = vmul.f32 %v768_v31, %v473_v27 }
 0x401   :  { %v772_v32 = vmul.f32 %v764_v48, %v472_v28 }
 0x402   :  { %v805_v33 = vadd.f32 %v804_v29, %v802_v30 }
 0x403   :  { %v775_v35 = vadd.f32 %v774_v26, %v772_v32 }
 0x404   :  { %v806_v37 = vrot.slane %v805_v33, 4 }
 0x405   :  { %v776_v38 = vadd.f32 %v775_v35, %v773_v34 }
 0x406   :  { %v807_v40 = vadd.f32 %v806_v37, %v805_v33 }
 0x407   :  { %v777_v42 = vrot.slane %v776_v38, 4 }
 0x408   :  { %v808_v39 = vrot.slane %v807_v40, 2 }
 0x409   :  { %v778_v0 = vadd.f32 %v777_v42, %v776_v38 }
 0x40a   :  { %v809_v1 = vadd.f32 %v808_v39, %v807_v40 }
 0x40b   :  { %v779_v36 = vrot.slane %v778_v0, 2 }
 0x40c   :  { %v810_v9 = vrot.slane %v809_v1, 1 }
 0x40d   :  { %v780_v44 = vadd.f32 %v779_v36, %v778_v0 }
 0x40e   :  { %v811_v41 = vadd.f32 %v810_v9, %v809_v1 }
 0x40f   :  { %v781_v45 = vrot.slane %v780_v44, 1 }
 0x411   :  { %v782_v2 = vadd.f32 %v781_v45, %v780_v44 }
 0x413   :  { %v812_v43 = vadd.f32 %v811_v41, %v782_v2 }
 0x415   :  { %v815_v47 = vadd.f32 %v814_v46, %v812_v43 }
 0x417   :  { %816 = vst [vmem:[%s1309_s5] sm:$0x1] %v815_v47 }
 0x418   :  { %821 = vsyncpa [#allocation3], 1 }

</bundles_post_ra>
